<compile_context>
chip_gen: v5e
topology: v5e:2x2
jax: 0.10.0
libtpu: 0.0.40
codegen_flags: <defaults>
</compile_context>

<pallas_src>
import numpy as np
import jax
import jax.numpy as jnp
from jax.experimental import pallas as pl
from jax.experimental.pallas import tpu as pltpu

# ----------------------------- config (opt.*) --------------------------------
L_2D = 4                       # opt.arch.posenc.L_2D
POSENC = True                  # opt.arch.posenc
BARF_C2F = (0.2, 0.6)          # opt.barf_c2f
PROGRESS = 0.5                 # self.progress (scalar nn.Parameter)
HIDDEN = 32                    # opt.arch.layers hidden width
SKIP = (2,)                    # opt.arch.skip
INPUT_2D_DIM = 2 + 4 * L_2D if POSENC else 2   # = 18
# layer dims (k_in, k_out) as in define_network():
#   L0: (INPUT_2D_DIM, HIDDEN)  L1: (HIDDEN, HIDDEN)
#   L2: (HIDDEN + INPUT_2D_DIM, HIDDEN)   (skip)   L3: (HIDDEN, 3)


def _pick_tile(m):
    """Largest point-tile that still leaves >=4 grid steps (megacore-friendly)."""
    for t in (2048, 1024, 512, 256):
        if m >= 4 * t:
            return t
    return 256


# ------------------------------- Pallas kernel --------------------------------
def _mlp_kernel(coord_ref, w0_ref, b0_ref, w1_ref, b1_ref,
                w2a_ref, w2b_ref, b2_ref, w3_ref, b3_ref, o_ref):
    """Fused posenc + 4-layer MLP for one tile of TILE_M points (feature-major).

    coord_ref: (2, T)  f32 raw 2-D coordinates (x row, y row)
    w*_ref:    transposed (k_out, k_in) bf16 weights; BARF c2f weights are already
               folded into the rows of w0 / w2b.  b*_ref: (k_out, 1) f32 biases.
    o_ref:     (3, T)  f32 rgb (lane-dense in the point dimension).
    """
    coord = coord_ref[...]                       # (2, T) f32
    xr = coord[0:1, :]                           # (1, T)
    yr = coord[1:2, :]

    # freq_l = pi * 2**l as an (L, 1) column, built from a 2-D iota (no array consts).
    l_idx = jax.lax.broadcasted_iota(jnp.int32, (L_2D, 1), 0).astype(jnp.float32)
    freq = jnp.exp(l_idx * np.float32(np.log(2.0))) * np.float32(np.pi)

    sx = xr * freq                               # (L, T)
    sy = yr * freq
    # feature order matches torch: [x, y, x_sin f0..3, x_cos f0..3, y_sin f0..3, y_cos f0..3]
    enc = jnp.concatenate(
        [coord, jnp.sin(sx), jnp.cos(sx), jnp.sin(sy), jnp.cos(sy)], axis=0)  # (18, T)
    enc_b = enc.astype(jnp.bfloat16)

    # layer 0 + relu
    f = jnp.dot(w0_ref[...], enc_b, preferred_element_type=jnp.float32) + b0_ref[...]
    f = jnp.maximum(f, 0.0)
    # layer 1 + relu
    f = jnp.dot(w1_ref[...], f.astype(jnp.bfloat16),
                preferred_element_type=jnp.float32) + b1_ref[...]
    f = jnp.maximum(f, 0.0)
    # layer 2 (skip: concat([feat, points_enc]) @ W2 == W2a @ feat + W2b @ enc) + relu
    f = (jnp.dot(w2a_ref[...], f.astype(jnp.bfloat16),
                 preferred_element_type=jnp.float32)
         + jnp.dot(w2b_ref[...], enc_b, preferred_element_type=jnp.float32)
         + b2_ref[...])
    f = jnp.maximum(f, 0.0)
    # layer 3 (output, no relu)
    f = jnp.dot(w3_ref[...], f.astype(jnp.bfloat16),
                preferred_element_type=jnp.float32) + b3_ref[...]
    # rgb = feat.sigmoid_() -- lane-dense (3, T) store
    o_ref[...] = jax.nn.sigmoid(f)


# ---------------------------- wrapper / JAX glue -------------------------------
def _c2f_weight(progress):
    start, end = BARF_C2F
    alpha = (progress - start) / (end - start) * L_2D
    k = jnp.arange(L_2D, dtype=jnp.float32)
    return (1.0 - jnp.cos(jnp.clip(alpha - k, 0.0, 1.0) * np.pi)) / 2.0


def neural_image_forward(coord_2d, params, progress):
    """Full forward: posenc + BARF c2f + MLP + sigmoid fused in one Pallas kernel."""
    w0, b0, w1, b1, w2, b2, w3, b3 = params

    # Fold the per-frequency BARF weights into the layer-0 / skip weight rows:
    # (enc * w) @ W == enc @ (w[:, None] * W).
    if BARF_C2F is not None:
        wgt = _c2f_weight(progress)
    else:
        wgt = jnp.ones((L_2D,), jnp.float32)
    col_w = jnp.concatenate([jnp.ones((2,), jnp.float32), jnp.tile(wgt, 4)])   # (18,)
    w0s = w0 * col_w[:, None]
    w2a = w2[:HIDDEN, :]
    w2b = w2[HIDDEN:, :] * col_w[:, None]

    # Feature-major (transposed) bf16 weights for the MXU; f32 column biases.
    w0t, w1t, w2at, w2bt, w3t = (
        w.T.astype(jnp.bfloat16) for w in (w0s, w1, w2a, w2b, w3))
    b0c, b1c, b2c, b3c = (
        b.reshape(-1, 1).astype(jnp.float32) for b in (b0, b1, b2, b3))

    lead = coord_2d.shape[:-1]
    coord_t = coord_2d.reshape(-1, 2).astype(jnp.float32).T        # (2, M): points on lanes
    m = coord_t.shape[1]
    tile_m = _pick_tile(m)
    m_pad = pl.cdiv(m, tile_m) * tile_m
    if m_pad != m:
        coord_t = jnp.pad(coord_t, ((0, 0), (0, m_pad - m)))

    def _full(shape):
        return pl.BlockSpec(shape, lambda i: (0,) * len(shape))

    out = pl.pallas_call(
        _mlp_kernel,
        out_shape=jax.ShapeDtypeStruct((3, m_pad), jnp.float32),
        grid_spec=pltpu.PrefetchScalarGridSpec(
            num_scalar_prefetch=0,
            grid=(m_pad // tile_m,),
            in_specs=[
                pl.BlockSpec((2, tile_m), lambda i: (0, i)),
                _full(w0t.shape), _full(b0c.shape),
                _full(w1t.shape), _full(b1c.shape),
                _full(w2at.shape), _full(w2bt.shape), _full(b2c.shape),
                _full(w3t.shape), _full(b3c.shape),
            ],
            out_specs=pl.BlockSpec((3, tile_m), lambda i: (0, i)),
        ),
        compiler_params=pltpu.CompilerParams(dimension_semantics=("parallel",)),
    )(coord_t, w0t, b0c, w1t, b1c, w2at, w2bt, b2c, w3t, b3c)

    rgb = out[:, :m].T                                             # (M, 3)
    return rgb.reshape(*lead, 3)


# ----------------------- pure-JAX f32 reference (for checking) -----------------
def positional_encoding_ref(coord_2d, progress):
    shape = coord_2d.shape
    freq = (2.0 ** jnp.arange(L_2D, dtype=jnp.float32)) * np.pi
    spectrum = coord_2d[..., None] * freq                          # [..., 2, L]
    input_enc = jnp.stack([jnp.sin(spectrum), jnp.cos(spectrum)], axis=-2)
    input_enc = input_enc.reshape(*shape[:-1], 4 * L_2D)
    if BARF_C2F is not None:
        weight = _c2f_weight(progress)
        enc_shape = input_enc.shape
        input_enc = (input_enc.reshape(-1, L_2D) * weight).reshape(enc_shape)
    return input_enc


def neural_image_forward_ref(coord_2d, params, progress):
    w0, b0, w1, b1, w2, b2, w3, b3 = params
    points_enc = jnp.concatenate(
        [coord_2d, positional_encoding_ref(coord_2d, progress)], axis=-1)
    f = jax.nn.relu(points_enc @ w0 + b0)
    f = jax.nn.relu(f @ w1 + b1)
    f = jax.nn.relu(jnp.concatenate([f, points_enc], axis=-1) @ w2 + b2)
    f = f @ w3 + b3
    return jax.nn.sigmoid(f)


def init_params(key):
    """Deterministic torch.nn.Linear-style init (uniform +-1/sqrt(fan_in))."""
    dims = [(INPUT_2D_DIM, HIDDEN), (HIDDEN, HIDDEN),
            (HIDDEN + INPUT_2D_DIM, HIDDEN), (HIDDEN, 3)]
    params = []
    for li, (k_in, k_out) in enumerate(dims):
        key, kw, kb = jax.random.split(key, 3)
        bound = 1.0 / np.sqrt(k_in)
        w = jax.random.uniform(kw, (k_in, k_out), jnp.float32, -bound, bound)
        b = jax.random.uniform(kb, (k_out,), jnp.float32, -bound, bound)
        if BARF_C2F is not None and li == 0:
            scale = np.sqrt(INPUT_2D_DIM / 2.0)   # first-layer rescale from __init__
            w = w * scale
            b = b * scale
        params.extend([w, b])
    return tuple(params)


# ----------------------------------- main -------------------------------------
if __name__ == "__main__":
    key = jax.random.PRNGKey(0)
    k_coord, k_param = jax.random.split(key)

    B, H, W = 2, 16, 16
    N = H * W                                          # 256 points per image
    # 2D coordinate grid in [-1, 1], shape [B, N, 2]
    coord_2d = jax.random.uniform(k_coord, (B, N, 2), jnp.float32, -1.0, 1.0)

    params = init_params(k_param)
    progress = jnp.float32(PROGRESS)

    rgb = jax.jit(neural_image_forward)(coord_2d, params, progress)
    jax.block_until_ready(rgb)

    assert rgb.shape == (B, N, 3)
    assert bool(jnp.all(jnp.isfinite(rgb)))
    assert bool(jnp.all((rgb >= 0.0) & (rgb <= 1.0)))  # sigmoid output range

    # compare against pure-f32 reference (kernel uses bf16 matmul operands)
    rgb_ref = neural_image_forward_ref(coord_2d, params, progress)
    max_err = float(jnp.max(jnp.abs(rgb - rgb_ref)))
    assert max_err < 5e-2, f"max abs error vs f32 reference: {max_err}"

    print("KERNEL_OK")
</pallas_src>

<mosaic_0001>
module attributes {stable_mosaic.version = 11 : i64} {
  func.func @_mlp_kernel(%arg0: i32, %arg1: memref<2x256xf32, #tpu.memory_space<vmem>>, %arg2: memref<32x18xbf16, #tpu.memory_space<vmem>>, %arg3: memref<32x1xf32, #tpu.memory_space<vmem>>, %arg4: memref<32x32xbf16, #tpu.memory_space<vmem>>, %arg5: memref<32x1xf32, #tpu.memory_space<vmem>>, %arg6: memref<32x32xbf16, #tpu.memory_space<vmem>>, %arg7: memref<32x18xbf16, #tpu.memory_space<vmem>>, %arg8: memref<32x1xf32, #tpu.memory_space<vmem>>, %arg9: memref<3x32xbf16, #tpu.memory_space<vmem>>, %arg10: memref<3x1xf32, #tpu.memory_space<vmem>>, %arg11: memref<3x256xf32, #tpu.memory_space<vmem>>) attributes {dimension_semantics = [#tpu.dimension_semantics<parallel>], iteration_bounds = array<i64: 2>, scalar_prefetch = 0 : i64, scratch_operands = 0 : i64, tpu.core_type = #tpu.core_type<tc>, window_params = [{transform_indices = @transform_0, window_bounds = array<i64: 2, 256>}, {pipeline_mode = #tpu.pipeline_mode<synchronous>, transform_indices = @transform_1, window_bounds = array<i64: 32, 18>}, {pipeline_mode = #tpu.pipeline_mode<synchronous>, transform_indices = @transform_2, window_bounds = array<i64: 32, 1>}, {pipeline_mode = #tpu.pipeline_mode<synchronous>, transform_indices = @transform_3, window_bounds = array<i64: 32, 32>}, {pipeline_mode = #tpu.pipeline_mode<synchronous>, transform_indices = @transform_4, window_bounds = array<i64: 32, 1>}, {pipeline_mode = #tpu.pipeline_mode<synchronous>, transform_indices = @transform_5, window_bounds = array<i64: 32, 32>}, {pipeline_mode = #tpu.pipeline_mode<synchronous>, transform_indices = @transform_6, window_bounds = array<i64: 32, 18>}, {pipeline_mode = #tpu.pipeline_mode<synchronous>, transform_indices = @transform_7, window_bounds = array<i64: 32, 1>}, {pipeline_mode = #tpu.pipeline_mode<synchronous>, transform_indices = @transform_8, window_bounds = array<i64: 3, 32>}, {pipeline_mode = #tpu.pipeline_mode<synchronous>, transform_indices = @transform_9, window_bounds = array<i64: 3, 1>}, {transform_indices = @transform_10, window_bounds = array<i64: 3, 256>}]} {
    %c0 = arith.constant 0 : index
    %c0_0 = arith.constant 0 : index
    %0 = vector.load %arg1[%c0, %c0_0] : memref<2x256xf32, #tpu.memory_space<vmem>>, vector<2x256xf32>
    %1 = vector.extract_strided_slice %0 {offsets = [0, 0], sizes = [1, 256], strides = [1, 1]} : vector<2x256xf32> to vector<1x256xf32>
    %2 = vector.extract_strided_slice %0 {offsets = [1, 0], sizes = [1, 256], strides = [1, 1]} : vector<2x256xf32> to vector<1x256xf32>
    %3 = tpu.iota {dimensions = array<i32: 0>} : vector<4x1xi32>
    %4 = arith.sitofp %3 : vector<4x1xi32> to vector<4x1xf32>
    %cst = arith.constant 0.693147182 : f32
    %5 = vector.broadcast %cst : f32 to vector<4x1xf32>
    %6 = arith.mulf %4, %5 : vector<4x1xf32>
    %7 = math.exp %6 : vector<4x1xf32>
    %cst_1 = arith.constant 3.14159274 : f32
    %8 = vector.broadcast %cst_1 : f32 to vector<4x1xf32>
    %9 = arith.mulf %7, %8 : vector<4x1xf32>
    %10 = vector.broadcast %1 : vector<1x256xf32> to vector<4x256xf32>
    %11 = vector.broadcast %9 : vector<4x1xf32> to vector<4x256xf32>
    %12 = arith.mulf %10, %11 : vector<4x256xf32>
    %13 = vector.broadcast %2 : vector<1x256xf32> to vector<4x256xf32>
    %14 = vector.broadcast %9 : vector<4x1xf32> to vector<4x256xf32>
    %15 = arith.mulf %13, %14 : vector<4x256xf32>
    %16 = math.sin %12 : vector<4x256xf32>
    %17 = math.cos %12 : vector<4x256xf32>
    %18 = math.sin %15 : vector<4x256xf32>
    %19 = math.cos %15 : vector<4x256xf32>
    %20 = tpu.concatenate %0, %16, %17, %18, %19 in 0 : vector<2x256xf32>, vector<4x256xf32>, vector<4x256xf32>, vector<4x256xf32>, vector<4x256xf32> -> vector<18x256xf32>
    %21 = arith.truncf %20 : vector<18x256xf32> to vector<18x256xbf16>
    %c0_2 = arith.constant 0 : index
    %c0_3 = arith.constant 0 : index
    %22 = vector.load %arg2[%c0_2, %c0_3] : memref<32x18xbf16, #tpu.memory_space<vmem>>, vector<32x18xbf16>
    %cst_4 = arith.constant dense<0.000000e+00> : vector<32x256xf32>
    %23 = tpu.matmul %22, %21, %cst_4 {dimension_numbers = #tpu.dot_dimension_numbers<[1], [0], [0], [1], [0, 0, 1, 1], [], []>} : vector<32x18xbf16>, vector<18x256xbf16>, vector<32x256xf32> -> vector<32x256xf32>
    %c0_5 = arith.constant 0 : index
    %c0_6 = arith.constant 0 : index
    %24 = vector.load %arg3[%c0_5, %c0_6] : memref<32x1xf32, #tpu.memory_space<vmem>>, vector<32x1xf32>
    %25 = vector.broadcast %24 : vector<32x1xf32> to vector<32x256xf32>
    %26 = arith.addf %23, %25 : vector<32x256xf32>
    %cst_7 = arith.constant 0.000000e+00 : f32
    %27 = vector.broadcast %cst_7 : f32 to vector<32x256xf32>
    %28 = arith.maximumf %26, %27 : vector<32x256xf32>
    %c0_8 = arith.constant 0 : index
    %c0_9 = arith.constant 0 : index
    %29 = vector.load %arg4[%c0_8, %c0_9] : memref<32x32xbf16, #tpu.memory_space<vmem>>, vector<32x32xbf16>
    %30 = arith.truncf %28 : vector<32x256xf32> to vector<32x256xbf16>
    %cst_10 = arith.constant dense<0.000000e+00> : vector<32x256xf32>
    %31 = tpu.matmul %29, %30, %cst_10 {dimension_numbers = #tpu.dot_dimension_numbers<[1], [0], [0], [1], [0, 0, 1, 1], [], []>} : vector<32x32xbf16>, vector<32x256xbf16>, vector<32x256xf32> -> vector<32x256xf32>
    %c0_11 = arith.constant 0 : index
    %c0_12 = arith.constant 0 : index
    %32 = vector.load %arg5[%c0_11, %c0_12] : memref<32x1xf32, #tpu.memory_space<vmem>>, vector<32x1xf32>
    %33 = vector.broadcast %32 : vector<32x1xf32> to vector<32x256xf32>
    %34 = arith.addf %31, %33 : vector<32x256xf32>
    %cst_13 = arith.constant 0.000000e+00 : f32
    %35 = vector.broadcast %cst_13 : f32 to vector<32x256xf32>
    %36 = arith.maximumf %34, %35 : vector<32x256xf32>
    %c0_14 = arith.constant 0 : index
    %c0_15 = arith.constant 0 : index
    %37 = vector.load %arg6[%c0_14, %c0_15] : memref<32x32xbf16, #tpu.memory_space<vmem>>, vector<32x32xbf16>
    %38 = arith.truncf %36 : vector<32x256xf32> to vector<32x256xbf16>
    %cst_16 = arith.constant dense<0.000000e+00> : vector<32x256xf32>
    %39 = tpu.matmul %37, %38, %cst_16 {dimension_numbers = #tpu.dot_dimension_numbers<[1], [0], [0], [1], [0, 0, 1, 1], [], []>} : vector<32x32xbf16>, vector<32x256xbf16>, vector<32x256xf32> -> vector<32x256xf32>
    %c0_17 = arith.constant 0 : index
    %c0_18 = arith.constant 0 : index
    %40 = vector.load %arg7[%c0_17, %c0_18] : memref<32x18xbf16, #tpu.memory_space<vmem>>, vector<32x18xbf16>
    %cst_19 = arith.constant dense<0.000000e+00> : vector<32x256xf32>
    %41 = tpu.matmul %40, %21, %cst_19 {dimension_numbers = #tpu.dot_dimension_numbers<[1], [0], [0], [1], [0, 0, 1, 1], [], []>} : vector<32x18xbf16>, vector<18x256xbf16>, vector<32x256xf32> -> vector<32x256xf32>
    %42 = arith.addf %39, %41 : vector<32x256xf32>
    %c0_20 = arith.constant 0 : index
    %c0_21 = arith.constant 0 : index
    %43 = vector.load %arg8[%c0_20, %c0_21] : memref<32x1xf32, #tpu.memory_space<vmem>>, vector<32x1xf32>
    %44 = vector.broadcast %43 : vector<32x1xf32> to vector<32x256xf32>
    %45 = arith.addf %42, %44 : vector<32x256xf32>
    %cst_22 = arith.constant 0.000000e+00 : f32
    %46 = vector.broadcast %cst_22 : f32 to vector<32x256xf32>
    %47 = arith.maximumf %45, %46 : vector<32x256xf32>
    %c0_23 = arith.constant 0 : index
    %c0_24 = arith.constant 0 : index
    %48 = vector.load %arg9[%c0_23, %c0_24] : memref<3x32xbf16, #tpu.memory_space<vmem>>, vector<3x32xbf16>
    %49 = arith.truncf %47 : vector<32x256xf32> to vector<32x256xbf16>
    %cst_25 = arith.constant dense<0.000000e+00> : vector<3x256xf32>
    %50 = tpu.matmul %48, %49, %cst_25 {dimension_numbers = #tpu.dot_dimension_numbers<[1], [0], [0], [1], [0, 0, 1, 1], [], []>} : vector<3x32xbf16>, vector<32x256xbf16>, vector<3x256xf32> -> vector<3x256xf32>
    %c0_26 = arith.constant 0 : index
    %c0_27 = arith.constant 0 : index
    %51 = vector.load %arg10[%c0_26, %c0_27] : memref<3x1xf32, #tpu.memory_space<vmem>>, vector<3x1xf32>
    %52 = vector.broadcast %51 : vector<3x1xf32> to vector<3x256xf32>
    %53 = arith.addf %50, %52 : vector<3x256xf32>
    %54 = arith.negf %53 : vector<3x256xf32>
    %55 = math.exp %54 : vector<3x256xf32>
    %cst_28 = arith.constant 1.000000e+00 : f32
    %56 = vector.broadcast %cst_28 : f32 to vector<3x256xf32>
    %57 = arith.addf %56, %55 : vector<3x256xf32>
    %58 = arith.divf %56, %57 : vector<3x256xf32>
    %c0_29 = arith.constant 0 : index
    %c0_30 = arith.constant 0 : index
    %59 = vector.load %arg11[%c0_29, %c0_30] : memref<3x256xf32, #tpu.memory_space<vmem>>, vector<3x256xf32>
    tpu.vector_store %arg11[%c0_29, %c0_30], %58 {strides = array<i32>} : memref<3x256xf32, #tpu.memory_space<vmem>>, vector<3x256xf32>,
    return
  }
  func.func @transform_0(%arg0: i32) -> (i32, i32) {
    %c0_i32 = arith.constant 0 : i32
    %c0_i32_0 = arith.constant 0 : i32
    return %c0_i32, %arg0 : i32, i32
  }
  func.func @transform_1(%arg0: i32) -> (i32, i32) {
    %c0_i32 = arith.constant 0 : i32
    %c0_i32_0 = arith.constant 0 : i32
    %c0_i32_1 = arith.constant 0 : i32
    return %c0_i32, %c0_i32_0 : i32, i32
  }
  func.func @transform_2(%arg0: i32) -> (i32, i32) {
    %c0_i32 = arith.constant 0 : i32
    %c0_i32_0 = arith.constant 0 : i32
    %c0_i32_1 = arith.constant 0 : i32
    return %c0_i32, %c0_i32_0 : i32, i32
  }
  func.func @transform_3(%arg0: i32) -> (i32, i32) {
    %c0_i32 = arith.constant 0 : i32
    %c0_i32_0 = arith.constant 0 : i32
    %c0_i32_1 = arith.constant 0 : i32
    return %c0_i32, %c0_i32_0 : i32, i32
  }
  func.func @transform_4(%arg0: i32) -> (i32, i32) {
    %c0_i32 = arith.constant 0 : i32
    %c0_i32_0 = arith.constant 0 : i32
    %c0_i32_1 = arith.constant 0 : i32
    return %c0_i32, %c0_i32_0 : i32, i32
  }
  func.func @transform_5(%arg0: i32) -> (i32, i32) {
    %c0_i32 = arith.constant 0 : i32
    %c0_i32_0 = arith.constant 0 : i32
    %c0_i32_1 = arith.constant 0 : i32
    return %c0_i32, %c0_i32_0 : i32, i32
  }
  func.func @transform_6(%arg0: i32) -> (i32, i32) {
    %c0_i32 = arith.constant 0 : i32
    %c0_i32_0 = arith.constant 0 : i32
    %c0_i32_1 = arith.constant 0 : i32
    return %c0_i32, %c0_i32_0 : i32, i32
  }
  func.func @transform_7(%arg0: i32) -> (i32, i32) {
    %c0_i32 = arith.constant 0 : i32
    %c0_i32_0 = arith.constant 0 : i32
    %c0_i32_1 = arith.constant 0 : i32
    return %c0_i32, %c0_i32_0 : i32, i32
  }
  func.func @transform_8(%arg0: i32) -> (i32, i32) {
    %c0_i32 = arith.constant 0 : i32
    %c0_i32_0 = arith.constant 0 : i32
    %c0_i32_1 = arith.constant 0 : i32
    return %c0_i32, %c0_i32_0 : i32, i32
  }
  func.func @transform_9(%arg0: i32) -> (i32, i32) {
    %c0_i32 = arith.constant 0 : i32
    %c0_i32_0 = arith.constant 0 : i32
    %c0_i32_1 = arith.constant 0 : i32
    return %c0_i32, %c0_i32_0 : i32, i32
  }
  func.func @transform_10(%arg0: i32) -> (i32, i32) {
    %c0_i32 = arith.constant 0 : i32
    %c0_i32_0 = arith.constant 0 : i32
    return %c0_i32, %arg0 : i32, i32
  }
}

</mosaic_0001>

<bundles_post_ra>
// kernel: tile.8
= control target key start
LH: loop header
LB: loop body
LE: loop exit
PB: predicated region body
PF: predicated region fallthrough
CT: control target
= control target key end

     0   :  { %s22_s0 = inlined_call_operand.vmem [shape: f32[4], index: 0, kind: input, shape index: {}]   ;;  %s23_s1 = inlined_call_operand.vmem [shape: f32[4,4], index: 1, kind: output, shape index: {}]  }
   0x1   :  { %v4_v0 = vld [vmem:[%s22_s0] ss:$0 sm:$0xff] }
   0x2   :  { %5 = vst [vmem:[%s23_s1] sm:$0xf] %v4_v0 }

// kernel: tile.9
= control target key start
LH: loop header
LB: loop body
LE: loop exit
PB: predicated region body
PF: predicated region fallthrough
CT: control target
= control target key end

     0   :  { %s37_s8 = smov 4   ;;  %s38_s9 = smov 8   ;;  %vm7_vm0 = vcmask 31744   ;;  %vm13_vm1 = vcmask 130144   ;;  %vm19_vm2 = vcmask 97344   ;;  %vm25_vm3 = vcmask 64544   ;;  %s55_s0 = inlined_call_operand.vmem [shape: f32[4,4], index: 0, kind: input, shape index: {}]   ;;  %s56_s1 = inlined_call_operand.vmem [shape: f32[16], index: 1, kind: output, shape index: {}]  }
   0x1   :  { %v4_v0 = vld [vmem:[%s55_s0] sm:$0xf]  ;;  %s36_s0 = smov 12  }
   0x2   :  { %5 = vst [vmem:[#allocation1] sm:$0xf] %v4_v0 }
   0x9   :  { %v10_v1 = vld [vmem:[#allocation1 + $0x3] sm:$0x1]   ;;  %v22_v2 = vld [vmem:[#allocation1 + $0x1] sm:$0x1]   ;;  %v16_v3 = vld [vmem:[#allocation1 + $0x2] sm:$0x1]  }
   0xa   :  { %11 = vrot.lane.b32.xlu0 %v10_v1, %s36_s0  ;;  %23 = vrot.lane.b32.xlu1 %v22_v2, %s37_s8  ;;  %v6_v4 = vld [vmem:[#allocation1] sm:$0x1]  }
   0xb   :  { %8 = vst.msk [vmem:[#allocation0] sm:$0x1] %vm7_vm0, %v6_v4  }
  0x12   :  { %17 = vrot.lane.b32.xlu0 %v16_v3, %s38_s9 }
  0x7c   :  { %v12_v5 = vpop.permute.xlu0 %11   ;;  %v24_v6 = vpop.permute.xlu1 %23  }
  0x7d   :  { %14 = vst.msk [vmem:[#allocation0] sm:$0x1] %vm13_vm1, %v12_v5  }
  0x84   :  { %v18_v7 = vpop.permute.xlu0 %17  }
  0x85   :  { %20 = vst.msk [vmem:[#allocation0] sm:$0x1] %vm19_vm2, %v18_v7  }
  0x86   :  { %26 = vst.msk [vmem:[#allocation0] sm:$0x1] %vm25_vm3, %v24_v6  }
  0x8d   :  { %v29_v8 = vld [vmem:[#allocation0] sm:$0x1] }
  0x8e   :  { %32 = vst [vmem:[%s56_s1] sm:$0x1] %v29_v8 }

// kernel: neural_image_forward.1
= control target key start
LH: loop header
LB: loop body
LE: loop exit
PB: predicated region body
PF: predicated region fallthrough
CT: control target
= control target key end

     0   :  { %s2355_s13 = smov 0   ;;  %s2931_s0 = inlined_call_operand.vmem [shape: f32[2,512], index: 0, kind: input, shape index: {}]   ;;  %s2932_s1 = inlined_call_operand.vmem [shape: bf16[32,18], index: 1, kind: input, shape index: {}]   ;;  %s2933_s2 = inlined_call_operand.vmem [shape: f32[32,1], index: 2, kind: input, shape index: {}]   ;;  %s2934_s3 = inlined_call_operand.vmem [shape: bf16[32,32], index: 3, kind: input, shape index: {}]   ;;  %s2935_s4 = inlined_call_operand.vmem [shape: f32[32,1], index: 4, kind: input, shape index: {}]   ;;  %s2936_s5 = inlined_call_operand.vmem [shape: bf16[32,32], index: 5, kind: input, shape index: {}]   ;;  %s2937_s6 = inlined_call_operand.vmem [shape: bf16[32,18], index: 6, kind: input, shape index: {}]   ;;  %s2938_s7 = inlined_call_operand.vmem [shape: f32[32,1], index: 7, kind: input, shape index: {}]   ;;  %s2939_s8 = inlined_call_operand.vmem [shape: bf16[3,32], index: 8, kind: input, shape index: {}]   ;;  %s2940_s9 = inlined_call_operand.vmem [shape: f32[3,1], index: 9, kind: input, shape index: {}]   ;;  %s2941_s10 = inlined_call_operand.vmem [shape: f32[3,512], index: 10, kind: output, shape index: {}]  }
   0x1 LB: > { %s2162_s14 = sadd.s32 4294967295, %s2291_s13   ;;  %p2166_p0 = scmp.ge.s32.totalorder %s2291_s13, 1  ;;  %s2291_s13 = sphi %s2355_s13, %s20_s13  }
   0x2   : > { %p313_p1 = scmp.lt.s32.totalorder %s2291_s13, 3 }
   0x4   : > { %p314_p2 = pnand %p2166_p0, %p313_p1 }
   0x5   : > { %s2167_s15 = sshll.u32 (!%p314_p2), %s2162_s14, 1 }
   0x6   : > { %317 = sbr.rel (%p314_p2) target bundleno = 905 (0x389), region = 60  ;;  %p352_p3 = scmp.lt.s32.totalorder (!%p314_p2), %s2167_s15, 3 }
   0xb   : > { %v365_v0 = vlaneseq  ;;  %v2293_v1 = vmov 0   ;;  %s2953_s15 = smov (!%p352_p3, %s2167_s15), 3  ;;  %v2294_v42 = vmov 683565275   ;;  %v2295_v44 = vmov 2475754826  }
   0xc   : > { %2272 = vset.pattern.permute.xlu0 %v2293_v1  ;;  %2273 = vset.pattern.permute.xlu1 %v2293_v1  ;;  %s2168_s16 = sshll.u32 %s2953_s15, 1  ;;  %v2296_v46 = vmov 2131351028   ;;  %v2297_v48 = vmov 2102212464   ;;  %s2170_s28 = sshll.u32 %s2953_s15, 2 }
   0xd   : > { %v366_v2 = vshrl.u32 %v365_v0, 7  ;;  %2274 = vset.pattern.permute.xlu2 %v2293_v1  ;;  %s355_s19 = scalar_lea.vmem %s2931_s0, %s2168_s16  ;;  %v2298_v50 = vmov 920167782   ;;  %v2299_v59 = vmov 1326507024   ;;  %s361_s11 = scalar_lea.vmem %s2941_s10, %s2170_s28 }
   0xe   : > { %v2372_v5 = vld [vmem:[%s355_s19] sm:$0xf] }
   0xf   : > { %v367_v3 = vcvt.s32.f32 %v366_v2  ;;  %1625 = vst [vmem:[#allocation1] ss:$4 sm:$0xff] %v2372_v5  ;;  %v381_v7 = vperm.slane %v2372_v5, 1  ;;  %v382_v8 = vperm.slane %v2372_v5, 3  ;;  %v373_v9 = vperm.slane %v2372_v5, 0 }
  0x11   : > { %v368_v4 = vmul.f32 0.6931472, %v367_v3  ;;  %v385_v10 = vperm.slane %v381_v7, 1  ;;  %v386_v11 = vperm.slane %v382_v8, 1  ;;  %v377_v13 = vperm.slane %v373_v9, 0 }
  0x13   : > { %v369_v6 = vmul.f32 1.442695, %v368_v4 }
  0x15   : > { %2275 = vpow2.f32 %v369_v6 }
  0x1b   : > { %v2276_v12 = vpop.eup %2275 }
  0x1c   : > { %v2378_v14 = vmul.f32 3.1415927, %v2276_v12 }
  0x1e   : > { %v2381_v15 = vmul.f32 %v385_v10, %v2378_v14  ;;  %v2384_v16 = vmul.f32 %v386_v11, %v2378_v14  ;;  %v2387_v17 = vmul.f32 %v377_v13, %v2378_v14 }
  0x20   : > { %v1007_v18 = vand.u32 2147483647, %v2381_v15  ;;  %v1010_v19 = vand.u32 2139095040, %v2381_v15  ;;  %v1162_v20 = vand.u32 2147483647, %v2384_v16  ;;  %v1165_v21 = vand.u32 2139095040, %v2384_v16 }
  0x21   : > { %v392_v25 = vand.u32 2139095040, %v2387_v17 }
  0x22   : > { %v1011_v22 = vshrl.u32 %v1010_v19, 23  ;;  %v1014_v23 = vand.u32 8388607, %v1007_v18  ;;  %v1166_v24 = vshrl.u32 %v1165_v21, 23  ;;  %v1169_v29 = vand.u32 8388607, %v1162_v20 }
  0x23   : > { %v393_v32 = vshrl.u32 %v392_v25, 23 }
  0x24   : > { %v2183_v26 = vadd.s32 4294967169, %v1011_v22  ;;  %v1015_v27 = vor.u32 8388608, %v1014_v23  ;;  %v2186_v28 = vadd.s32 4294967169, %v1166_v24  ;;  %v1170_v35 = vor.u32 8388608, %v1169_v29 }
  0x25   : > { %v2404_v40 = vadd.s32 4294967169, %v393_v32 }
  0x26   : > { %v1017_v30 = vadd.s32 1, %v2183_v26  ;;  %v1172_v31 = vadd.s32 1, %v2186_v28  ;;  %v2398_v34 = vshll.u32 %v1015_v27, 8  ;;  %v2412_v53 = vshll.u32 %v1170_v35, 8 }
  0x28   : > { %vm1018_vm0 = vcmp.gt.s32.totalorder %v1017_v30, 0  ;;  %vm1173_vm1 = vcmp.gt.s32.totalorder %v1172_v31, 0  ;;  %v1056_v52 = vand.u32 65535, %v2398_v34  ;;  %v1057_v57 = vshrl.u32 %v2398_v34, 16 }
  0x29   : > { %v1019_v33 = vsel %vm1018_vm0, %v1017_v30, 0  ;;  %v1174_v37 = vsel %vm1173_vm1, %v1172_v31, 0 }
  0x2a   : > { %v1021_v36 = vand.u32 31, %v1019_v33  ;;  %v2400_v38 = vshrl.u32 %v1019_v33, 5  ;;  %v2402_v39 = vand.u32 31, %v1174_v37  ;;  %v2432_v8 = vshrl.u32 %v1174_v37, 5 }
  0x2c   : > { %v1022_v41 = vsub.s32 32, %v1021_v36  ;;  %v1024_v43 = vshll.u32 %v2294_v42, %v1021_v36  ;;  %v1027_v45 = vshll.u32 %v2295_v44, %v1021_v36  ;;  %v1030_v47 = vshll.u32 %v2296_v46, %v1021_v36 }
  0x2d   : > { %v1033_v49 = vshll.u32 %v2297_v48, %v1021_v36  ;;  %v1036_v51 = vshll.u32 %v2298_v50, %v1021_v36  ;;  %vm1039_vm2 = vcmp.lt.s32.totalorder %v2400_v38, 1  ;;  %vm1042_vm3 = vcmp.lt.s32.totalorder %v2400_v38, 4 }
  0x2e   : > { %v1025_v54 = vshrl.u32 %v2295_v44, %v1022_v41  ;;  %v1028_v55 = vshrl.u32 %v2296_v46, %v1022_v41  ;;  %v1031_v56 = vshrl.u32 %v2297_v48, %v1022_v41  ;;  %v1034_v58 = vshrl.u32 %v2298_v50, %v1022_v41 }
  0x2f   : > { %v1037_v60 = vshrl.u32 %v2299_v59, %v1022_v41  ;;  %v2423_v0 = vsub.s32 32, %v2402_v39  ;;  %v1023_v2 = vshrl.u32 %v2294_v42, %v1022_v41  ;;  %vm1041_vm4 = vcmp.lt.s32.totalorder %v2400_v38, 3 }
  0x30   : > { %v1026_v61 = vor.u32 %v1025_v54, %v1024_v43  ;;  %v1029_v62 = vor.u32 %v1028_v55, %v1027_v45  ;;  %v1032_v63 = vor.u32 %v1031_v56, %v1030_v47  ;;  %v1035_v3 = vor.u32 %v1034_v58, %v1033_v49 }
  0x31   : > { %v1038_v4 = vor.u32 %v1037_v60, %v1036_v51  ;;  %vm1040_vm5 = vcmp.lt.s32.totalorder %v2400_v38, 2  ;;  %v1179_v11 = vshll.u32 %v2294_v42, %v2402_v39  ;;  %v1182_v12 = vshll.u32 %v2295_v44, %v2402_v39 }
  0x32   : > { %v1047_v6 = vsel %vm1039_vm2, %v1026_v61, %v1029_v62  ;;  %v1051_v7 = vsel %vm1039_vm2, %v1029_v62, %v1032_v63  ;;  %v1048_v9 = vsel %vm1042_vm3, %v1035_v3, 920167782  ;;  %v1044_v13 = vsel %vm1042_vm3, %v1032_v63, 2102212464 }
  0x33   : > { %v1052_v10 = vsel %vm1042_vm3, %v1038_v4, 1326507024  ;;  %v1049_v19 = vsel %vm1041_vm4, %v1032_v63, %v1048_v9  ;;  %v1180_v22 = vshrl.u32 %v2295_v44, %v2423_v0  ;;  %v1043_v23 = vsel %vm1039_vm2, %v1023_v2, %v1026_v61 }
  0x34   : > { %v1053_v21 = vsel %vm1041_vm4, %v1035_v3, %v1052_v10  ;;  %v1050_v24 = vsel %vm1040_vm5, %v1047_v6, %v1049_v19  ;;  %v1183_v26 = vshrl.u32 %v2296_v46, %v2423_v0  ;;  %v1045_v31 = vsel %vm1041_vm4, %v1029_v62, %v1044_v13 }
  0x35   : > { %v1054_v25 = vsel %vm1040_vm5, %v1051_v7, %v1053_v21  ;;  %v1080_v29 = vand.u32 65535, %v1050_v24  ;;  %v1081_v30 = vshrl.u32 %v1050_v24, 16  ;;  %v2460_v32 = vor.u32 %v1180_v22, %v1179_v11 }
  0x36   : > { %v1058_v27 = vand.u32 65535, %v1054_v25  ;;  %v1059_v28 = vshrl.u32 %v1054_v25, 16  ;;  %v2462_v33 = vor.u32 %v1183_v26, %v1182_v12  ;;  %v1185_v35 = vshll.u32 %v2296_v46, %v2402_v39 }
  0x37   : > { %v1186_v43 = vshrl.u32 %v2297_v48, %v2423_v0  ;;  %v1082_v47 = vmul.u32 %v1080_v29, %v1056_v52  ;;  %v1083_v49 = vmul.u32 %v1081_v30, %v1056_v52  ;;  %v1084_v51 = vmul.u32 %v1080_v29, %v1057_v57 }
  0x38   : > { %v1060_v36 = vmul.u32 %v1058_v27, %v1056_v52  ;;  %v1061_v37 = vmul.u32 %v1059_v28, %v1056_v52  ;;  %v1062_v41 = vmul.u32 %v1058_v27, %v1057_v57  ;;  %v1063_v45 = vmul.u32 %v1059_v28, %v1057_v57 }
  0x39   : > { %v1085_v58 = vmul.u32 %v1081_v30, %v1057_v57  ;;  %v1086_v61 = vshll.u32 %v1083_v49, 16  ;;  %v1087_v62 = vshrl.u32 %v1083_v49, 16  ;;  %v1088_v63 = vshll.u32 %v1084_v51, 16 }
  0x3a   : > { %v1064_v54 = vshll.u32 %v1061_v37, 16  ;;  %v1065_v55 = vshrl.u32 %v1061_v37, 16  ;;  %v1066_v56 = vshll.u32 %v1062_v41, 16  ;;  %v1067_v60 = vshrl.u32 %v1062_v41, 16 }
  0x3b   : > { %v1089_v3 = vshrl.u32 %v1084_v51, 16  ;;  %v1188_v4 = vshll.u32 %v2297_v48, %v2402_v39  ;;  %vm1090_vm7 = vc.u32 %v1082_v47, %v1086_v61  ;;  %v1092_v7 = vadd.s32 %v1086_v61, %v1082_v47 }
  0x3c   : > { %vm1068_vm6 = vc.u32 %v1060_v36, %v1064_v54  ;;  %v1070_v2 = vadd.s32 %v1064_v54, %v1060_v36  ;;  %v1189_v52 = vshrl.u32 %v2298_v50, %v2423_v0  ;;  %v1091_v57 = vsel %vm1090_vm7, 1, %v2293_v1 }
  0x3d   : > { %v1069_v6 = vsel %vm1068_vm6, 1, %v2293_v1  ;;  %v1191_v10 = vshll.u32 %v2298_v50, %v2402_v39  ;;  %v1093_v12 = vadd.s32 %v1091_v57, %v1085_v58  ;;  %vm1094_vm9 = vc.u32 %v1092_v7, %v1088_v63 }
  0x3e   : > { %v1071_v9 = vadd.s32 %v1069_v6, %v1063_v45  ;;  %vm1072_vm8 = vc.u32 %v1070_v2, %v1066_v56  ;;  %v1187_v13 = vor.u32 %v1186_v43, %v1185_v35  ;;  %v1095_v21 = vsel %vm1094_vm9, 1, %v2293_v1 }
  0x3f   : > { %v1073_v11 = vsel %vm1072_vm8, 1, %v2293_v1  ;;  %v1190_v22 = vor.u32 %v1189_v52, %v1188_v4  ;;  %v1192_v24 = vshrl.u32 %v2299_v59, %v2423_v0  ;;  %v2480_v25 = vadd.s32 %v1092_v7, %v1088_v63 }
  0x40   : > { %v1075_v19 = vadd.s32 %v1073_v11, %v1071_v9  ;;  %v1097_v26 = vadd.s32 %v1095_v21, %v1093_v12  ;;  %vm1194_vm10 = vcmp.lt.s32.totalorder %v2432_v8, 1  ;;  %vm1196_vm11 = vcmp.lt.s32.totalorder %v2432_v8, 3 }
  0x41   : > { %v1193_v27 = vor.u32 %v1192_v24, %v1191_v10  ;;  %vm1195_vm12 = vcmp.lt.s32.totalorder %v2432_v8, 2  ;;  %vm1197_vm13 = vcmp.lt.s32.totalorder %v2432_v8, 4  ;;  %v1046_v28 = vsel %vm1040_vm5, %v1043_v23, %v1045_v31 }
  0x42   : > { %v1076_v39 = vadd.s32 %v1075_v19, %v1065_v55  ;;  %v1098_v29 = vadd.s32 %v1097_v26, %v1087_v62  ;;  %v1202_v30 = vsel %vm1194_vm10, %v2460_v32, %v2462_v33  ;;  %v1203_v35 = vsel %vm1197_vm13, %v1190_v22, 920167782 }
  0x43   : > { %v1204_v37 = vsel %vm1196_vm11, %v1187_v13, %v1203_v35  ;;  %v1206_v41 = vsel %vm1194_vm10, %v2462_v33, %v1187_v13  ;;  %v1211_v38 = vand.u32 65535, %v2412_v53  ;;  %v1207_v43 = vsel %vm1197_vm13, %v1193_v27, 1326507024 }
  0x44   : > { %v2494_v36 = vadd.s32 %v1076_v39, %v1067_v60  ;;  %v1099_v23 = vadd.s32 %v1098_v29, %v1089_v3  ;;  %v1205_v31 = vsel %vm1195_vm12, %v1202_v30, %v1204_v37  ;;  %v1212_v45 = vshrl.u32 %v2412_v53, 16 }
  0x45   : > { %v1100_v47 = vmul.u32 %v2398_v34, %v1046_v28  ;;  %v1208_v49 = vsel %vm1196_vm11, %v1190_v22, %v1207_v43  ;;  %v1235_v51 = vand.u32 65535, %v1205_v31  ;;  %v1236_v56 = vshrl.u32 %v1205_v31, 16 }
  0x46   : > { %vm1102_vm14 = vc.u32 %v2494_v36, %v2480_v25  ;;  %v1103_v54 = vadd.s32 1, %v1099_v23  ;;  %v1209_v55 = vsel %vm1195_vm12, %v1206_v41, %v1208_v49  ;;  %v399_v58 = vadd.s32 1, %v2404_v40 }
  0x47   : > { %v1178_v60 = vshrl.u32 %v2294_v42, %v2423_v0  ;;  %v1213_v61 = vand.u32 65535, %v1209_v55  ;;  %v1214_v62 = vshrl.u32 %v1209_v55, 16  ;;  %v1199_v63 = vsel %vm1197_vm13, %v1187_v13, 2102212464 }
  0x48   : > { %v1104_v34 = vsel %vm1102_vm14, %v1103_v54, %v1099_v23  ;;  %v1238_v2 = vmul.u32 %v1236_v56, %v1211_v38  ;;  %v1239_v3 = vmul.u32 %v1235_v51, %v1212_v45  ;;  %v1237_v52 = vmul.u32 %v1235_v51, %v1211_v38 }
  0x49   : > { %v1105_v4 = vadd.s32 %v1104_v34, %v1100_v47  ;;  %v1215_v6 = vmul.u32 %v1213_v61, %v1211_v38  ;;  %v1216_v7 = vmul.u32 %v1214_v62, %v1211_v38  ;;  %v1217_v9 = vmul.u32 %v1213_v61, %v1212_v45 }
  0x4a   : > { %v1241_v57 = vshll.u32 %v1238_v2, 16  ;;  %vm400_vm15 = vcmp.gt.s32.totalorder %v399_v58, 0  ;;  %v1198_v40 = vsel %vm1194_vm10, %v1178_v60, %v2460_v32  ;;  %v1218_v0 = vmul.u32 %v1214_v62, %v1212_v45 }
  0x4b   : > { %v1106_v10 = vadd.s32 536870912, %v1105_v4  ;;  %v1219_v11 = vshll.u32 %v1216_v7, 16  ;;  %v1200_v12 = vsel %vm1196_vm11, %v2462_v33, %v1199_v63  ;;  %v1221_v13 = vshll.u32 %v1217_v9, 16 }
  0x4c   : > { %v1240_v19 = vmul.u32 %v1236_v56, %v1212_v45  ;;  %v1243_v21 = vshll.u32 %v1239_v3, 16  ;;  %vm1245_vm1 = vc.u32 %v1237_v52, %v1241_v57  ;;  %v1247_v27 = vadd.s32 %v1241_v57, %v1237_v52 }
  0x4d   : > { %v2525_v22 = vshrl.u32 %v1106_v10, 30  ;;  %vm1223_vm0 = vc.u32 %v1215_v6, %v1219_v11  ;;  %v1225_v24 = vadd.s32 %v1219_v11, %v1215_v6  ;;  %v1246_v39 = vsel %vm1245_vm1, 1, %v2293_v1 }
  0x4e   : > { %v1224_v26 = vsel %vm1223_vm0, 1, %v2293_v1  ;;  %v401_v32 = vsel %vm400_vm15, %v399_v58, 0  ;;  %v1220_v29 = vshrl.u32 %v1216_v7, 16  ;;  %v1242_v35 = vshrl.u32 %v1238_v2, 16 }
  0x4f   : > { %v1108_v28 = vshll.u32 %v2525_v22, 30  ;;  %v1226_v30 = vadd.s32 %v1224_v26, %v1218_v0  ;;  %vm1227_vm2 = vc.u32 %v1225_v24, %v1221_v13  ;;  %v1248_v37 = vadd.s32 %v1246_v39, %v1240_v19 }
  0x50   : > { %v1228_v33 = vsel %vm1227_vm2, 1, %v2293_v1  ;;  %vm1249_vm3 = vc.u32 %v1247_v27, %v1243_v21  ;;  %v1222_v38 = vshrl.u32 %v1217_v9, 16  ;;  %v1244_v43 = vshrl.u32 %v1239_v3, 16 }
  0x51   : > { %v1109_v41 = vsub.s32 %v1105_v4, %v1108_v28  ;;  %v1230_v23 = vadd.s32 %v1228_v33, %v1226_v30  ;;  %v1250_v31 = vsel %vm1249_vm3, 1, %v2293_v1  ;;  %v2533_v45 = vadd.s32 %v1247_v27, %v1243_v21 }
  0x52   : > { %v1252_v47 = vadd.s32 %v1250_v31, %v1248_v37  ;;  %v403_v54 = vand.u32 31, %v401_v32  ;;  %v1201_v55 = vsel %vm1195_vm12, %v1198_v40, %v1200_v12  ;;  %v389_v61 = vand.u32 2147483647, %v2387_v17 }
  0x53   : > { %vm1110_vm4 = vcmp.lt.s32.totalorder %v1109_v41, 0  ;;  %v1111_v49 = vsub.s32 0, %v1109_v41  ;;  %v1231_v51 = vadd.s32 %v1230_v23, %v1220_v29  ;;  %v1255_v63 = vmul.u32 %v2412_v53, %v1201_v55 }
  0x54   : > { %v1253_v56 = vadd.s32 %v1252_v47, %v1242_v35  ;;  %v404_v2 = vsub.s32 32, %v403_v54  ;;  %vm1009_vm6 = vcmp.lt.s32.totalorder %v2381_v15, 0  ;;  %v1101_v8 = vadd.s32 %v2480_v25, %v2494_v36 }
  0x55   : > { %v1112_v58 = vsel %vm1110_vm4, %v1111_v49, %v1109_v41  ;;  %v2537_v60 = vadd.s32 %v1231_v51, %v1222_v38  ;;  %v1131_v6 = vsub.s32 4, %v2525_v22  ;;  %v396_v7 = vand.u32 8388607, %v389_v61 }
  0x56   : > { %v1113_v62 = vclz %v1112_v58  ;;  %v1254_v34 = vadd.s32 %v1253_v56, %v1244_v43  ;;  %v409_v52 = vshll.u32 %v2295_v44, %v403_v54  ;;  %v412_v9 = vshll.u32 %v2296_v46, %v403_v54 }
  0x57   : > { %vm1257_vm5 = vc.u32 %v2537_v60, %v2533_v45  ;;  %v415_v57 = vshll.u32 %v2297_v48, %v403_v54  ;;  %v410_v0 = vshrl.u32 %v2296_v46, %v404_v2  ;;  %v413_v11 = vshrl.u32 %v2297_v48, %v404_v2 }
  0x58   : > { %v2184_v3 = vadd.s32 4294967294, %v1113_v62  ;;  %v1258_v4 = vadd.s32 1, %v1254_v34  ;;  %v416_v13 = vshrl.u32 %v2298_v50, %v404_v2  ;;  %v2555_v21 = vshrl.u32 %v401_v32, 5 }
  0x59   : > { %v418_v24 = vshll.u32 %v2298_v50, %v403_v54  ;;  %v419_v26 = vshrl.u32 %v2299_v59, %v404_v2  ;;  %v406_v28 = vshll.u32 %v2294_v42, %v403_v54  ;;  %v407_v29 = vshrl.u32 %v2295_v44, %v404_v2 }
  0x5a   : > { %vm2185_vm7 = vcmp.lt.s32.totalorder %v2184_v3, 0  ;;  %v1259_v53 = vsel %vm1257_vm5, %v1258_v4, %v1254_v34  ;;  %v1132_v30 = vsel %vm1009_vm6, %v1131_v6, %v2525_v22  ;;  %v397_v35 = vor.u32 8388608, %v396_v7 }
  0x5b   : > { %v1116_v10 = vsel %vm2185_vm7, 0, %v2184_v3  ;;  %v1260_v40 = vadd.s32 %v1259_v53, %v1255_v63  ;;  %v411_v37 = vor.u32 %v410_v0, %v409_v52  ;;  %v414_v38 = vor.u32 %v413_v11, %v412_v9 }
  0x5c   : > { %v1117_v25 = vsub.s32 32, %v1116_v10  ;;  %v1118_v36 = vshll.u32 %v1109_v41, %v1116_v10  ;;  %v1121_v12 = vsub.s32 4294967266, %v1116_v10  ;;  %v417_v23 = vor.u32 %v416_v13, %v415_v57 }
  0x5d   : > { %v1261_v19 = vadd.s32 536870912, %v1260_v40  ;;  %v420_v43 = vor.u32 %v419_v26, %v418_v24  ;;  %vm421_vm8 = vcmp.lt.s32.totalorder %v2555_v21, 1  ;;  %vm424_vm9 = vcmp.lt.s32.totalorder %v2555_v21, 4 }
  0x5e   : > { %v1119_v39 = vshrl.u32 %v1101_v8, %v1117_v25  ;;  %v1122_v27 = vadd.s32 127, %v1121_v12  ;;  %vm2571_vm10 = vcmp.le.f32.partialorder %v1007_v18, 0.7853982  ;;  %v408_v51 = vor.u32 %v407_v29, %v406_v28 }
  0x5f   : > { %v2564_v33 = vshrl.u32 %v1261_v19, 30  ;;  %v1134_v54 = vsel %vm2571_vm10, 0, %v1132_v30  ;;  %vm422_vm11 = vcmp.lt.s32.totalorder %v2555_v21, 2  ;;  %vm423_vm12 = vcmp.lt.s32.totalorder %v2555_v21, 3 }
  0x60   : > { %v1120_v32 = vor.u32 %v1119_v39, %v1118_v36  ;;  %v1123_v41 = vshll.u32 %v1122_v27, 23  ;;  %v405_v58 = vshrl.u32 %v2294_v42, %v404_v2  ;;  %v430_v18 = vsel %vm424_vm9, %v417_v23, 920167782 }
  0x61   : > { %v1263_v31 = vshll.u32 %v2564_v33, 30  ;;  %v433_v62 = vsel %vm421_vm8, %v411_v37, %v414_v38  ;;  %v434_v63 = vsel %vm424_vm9, %v420_v43, 1326507024  ;;  %v2586_v3 = vshll.u32 %v397_v35, 8 }
  0x62   : > { %v1124_v22 = vor.u32 4788187, %v1123_v41  ;;  %v1127_v49 = vcvt.s32.f32 %v1120_v32  ;;  %v1151_v8 = vadd.s32 3, %v1134_v54  ;;  %v429_v6 = vsel %vm421_vm8, %v408_v51, %v411_v37 }
  0x63   : > { %v1264_v55 = vsub.s32 %v1260_v40, %v1263_v31  ;;  %v435_v2 = vsel %vm423_vm12, %v417_v23, %v434_v63  ;;  %v431_v52 = vsel %vm423_vm12, %v414_v38, %v430_v18  ;;  %v438_v9 = vand.u32 65535, %v2586_v3 }
  0x64   : > { %v1125_v56 = vand.u32 2147483647, %v1124_v22  ;;  %v436_v53 = vsel %vm422_vm11, %v433_v62, %v435_v2  ;;  %v1256_v0 = vadd.s32 %v2533_v45, %v2537_v60  ;;  %v426_v11 = vsel %vm424_vm9, %v414_v38, 2102212464 }
  0x65   : > { %vm1265_vm13 = vcmp.lt.s32.totalorder %v1264_v55, 0  ;;  %v1266_v34 = vsub.s32 0, %v1264_v55  ;;  %v440_v40 = vand.u32 65535, %v436_v53  ;;  %v2602_v25 = vshrl.u32 %v2586_v3, 16 }
  0x66   : > { %v1128_v4 = vmul.f32 %v1127_v49, %v1125_v56  ;;  %v441_v36 = vshrl.u32 %v436_v53, 16  ;;  %v2606_v13 = vand.u32 3, %v1134_v54  ;;  %v432_v24 = vsel %vm422_vm11, %v429_v6, %v431_v52 }
  0x67   : > { %v1267_v7 = vsel %vm1265_vm13, %v1266_v34, %v1264_v55  ;;  %v2615_v60 = vand.u32 3, %v1151_v8  ;;  %v425_v26 = vsel %vm421_vm8, %v405_v58, %v408_v51  ;;  %v427_v28 = vsel %vm423_vm12, %v411_v37, %v426_v11 }
  0x68   : > { %v1129_v57 = vxor.u32 2147483648, %v1128_v4  ;;  %v1268_v10 = vclz %v1267_v7  ;;  %v2619_v39 = vmul.u32 %v441_v36, %v438_v9  ;;  %v442_v29 = vmul.u32 %v440_v40, %v438_v9 }
  0x69   : > { %v2626_v35 = vmul.u32 %v440_v40, %v2602_v25  ;;  %v463_v41 = vshrl.u32 %v432_v24, 16  ;;  %vm1164_vm15 = vcmp.lt.s32.totalorder %v2384_v16, 0  ;;  %v462_v22 = vand.u32 65535, %v432_v24 }
  0x6a   : > { %v1130_v12 = vsel %vm1009_vm6, %v1129_v57, %v1128_v4  ;;  %v2187_v19 = vadd.s32 4294967294, %v1268_v10  ;;  %v446_v32 = vshll.u32 %v2619_v39, 16  ;;  %vm1157_vm1 = vcmp.eq.s32.totalorder %v2615_v60, 2 }
  0x6b   : > { %v2613_v45 = vsel %vm2571_vm10, %v2381_v15, %v1130_v12  ;;  %vm1466_vm2 = vcmp.eq.s32.totalorder %v2606_v13, 2  ;;  %v2638_v58 = vsel %vm422_vm11, %v425_v26, %v427_v28  ;;  %v2641_v18 = vmul.u32 %v463_v41, %v438_v9 }
  0x6c   : > { %v1135_v27 = vmul.f32 %v2613_v45, %v2613_v45  ;;  %vm2188_vm14 = vcmp.lt.s32.totalorder %v2187_v19, 0  ;;  %vm2630_vm0 = vc.u32 %v442_v29, %v446_v32  ;;  %v448_v4 = vshll.u32 %v2626_v35, 16 }
  0x6d   : > { %v1271_v30 = vsel %vm2188_vm14, 0, %v2187_v19  ;;  %vm1154_vm3 = vcmp.eq.s32.totalorder %v2615_v60, 0  ;;  %vm1463_vm4 = vcmp.eq.s32.totalorder %v2606_v13, 0  ;;  %vm2648_vm5 = vcmp.le.f32.partialorder %v1162_v20, 0.7853982 }
  0x6e   : > { %v1136_v38 = vmul.f32 -0.001358992, %v1135_v27  ;;  %v1143_v23 = vmul.f32 -0.00019511016, %v1135_v27  ;;  %v1272_v31 = vsub.s32 32, %v1271_v30  ;;  %v1273_v43 = vshll.u32 %v1264_v55, %v1271_v30 }
  0x6f   : > { %v1276_v47 = vsub.s32 4294967266, %v1271_v30  ;;  %v445_v55 = vmul.u32 %v441_v36, %v2602_v25  ;;  %v1286_v6 = vsub.s32 4, %v2564_v33  ;;  %v451_v2 = vsel %vm2630_vm0, 1, %v2293_v1 }
  0x70   : > { %v1137_v49 = vadd.f32 0.041655596, %v1136_v38  ;;  %v1144_v51 = vadd.f32 0.008332121, %v1143_v23  ;;  %v1274_v54 = vshrl.u32 %v1256_v0, %v1272_v31  ;;  %v464_v7 = vmul.u32 %v462_v22, %v438_v9 }
  0x71   : > { %v1277_v56 = vadd.s32 127, %v1276_v47  ;;  %vm1153_vm6 = vcmp.lt.s32.totalorder %v2615_v60, 2  ;;  %vm1462_vm7 = vcmp.lt.s32.totalorder %v2606_v13, 2  ;;  %v447_v57 = vshrl.u32 %v2619_v39, 16 }
  0x72   : > { %v1138_v62 = vmul.f32 %v1137_v49, %v1135_v27  ;;  %v1145_v34 = vmul.f32 %v1144_v51, %v1135_v27  ;;  %v1275_v63 = vor.u32 %v1274_v54, %v1273_v43  ;;  %v452_v20 = vadd.s32 %v446_v32, %v442_v29 }
  0x73   : > { %v1278_v21 = vshll.u32 %v1277_v56, 23  ;;  %vm1150_vm8 = vweird.f32 %v2381_v15  ;;  %v453_v0 = vadd.s32 %v451_v2, %v445_v55  ;;  %v466_v11 = vmul.u32 %v462_v22, %v2602_v25 }
  0x74   : > { %v1139_v52 = vadd.f32 -0.4999988, %v1138_v62  ;;  %v1146_v53 = vadd.f32 -0.16666654, %v1145_v34  ;;  %v1282_v40 = vcvt.s32.f32 %v1275_v63  ;;  %vm454_vm9 = vc.u32 %v452_v20, %v448_v4 }
  0x75   : > { %v1279_v10 = vor.u32 4788187, %v1278_v21  ;;  %v468_v9 = vshll.u32 %v2641_v18, 16  ;;  %v455_v24 = vsel %vm454_vm9, 1, %v2293_v1  ;;  %v467_v26 = vmul.u32 %v463_v41, %v2602_v25 }
  0x76   : > { %v1140_v36 = vmul.f32 %v1139_v52, %v1135_v27  ;;  %v1147_v12 = vmul.f32 %v1146_v53, %v1135_v27  ;;  %v470_v28 = vshll.u32 %v466_v11, 16  ;;  %v1287_v30 = vsel %vm1164_vm15, %v1286_v6, %v2564_v33  ;;  %v1674_v27 = vld [vmem:[%s2933_s2 + $0x10] sm:$0xff] }
  0x77   : > { %v1280_v19 = vand.u32 2147483647, %v1279_v10  ;;  %v457_v32 = vadd.s32 %v455_v24, %v453_v0  ;;  %v449_v23 = vshrl.u32 %v2626_v35, 16  ;;  %vm472_vm10 = vc.u32 %v464_v7, %v468_v9  ;;  %1688 = vperm.xlu0 %2272, %v1674_v27  }
  0x78   : > { %v1141_v39 = vadd.f32 1.0, %v1140_v36  ;;  %v1148_v29 = vadd.f32 1.0, %v1147_v12  ;;  %v474_v31 = vadd.s32 %v468_v9, %v464_v7  ;;  %v469_v41 = vshrl.u32 %v2641_v18, 16 }
  0x79   : > { %v1283_v38 = vmul.f32 %v1282_v40, %v1280_v19  ;;  %v473_v47 = vsel %vm472_vm10, 1, %v2293_v1  ;;  %v458_v33 = vadd.s32 %v457_v32, %v447_v57  ;;  %v471_v37 = vshrl.u32 %v466_v11, 16 }
  0x7a   : > { %v1149_v43 = vmul.f32 %v1148_v29, %v2613_v45  ;;  %v1158_v25 = vxor.u32 2147483648, %v1141_v39  ;;  %v475_v49 = vadd.s32 %v473_v47, %v467_v26  ;;  %vm476_vm11 = vc.u32 %v474_v31, %v470_v28 }
  0x7b   : > { %v1284_v22 = vxor.u32 2147483648, %v1283_v38  ;;  %v477_v56 = vsel %vm476_vm11, 1, %v2293_v1  ;;  %v2681_v55 = vadd.s32 %v474_v31, %v470_v28  ;;  %v374_v18 = vperm.slane %v2372_v5, 2 }
  0x7c   : > { %v1155_v51 = vxor.u32 2147483648, %v1149_v43  ;;  %v1159_v54 = vsel %vm1157_vm1, %v1158_v25, %v1149_v43  ;;  %v1468_v35 = vsel %vm1466_vm2, %v1158_v25, %v1149_v43  ;;  %v479_v4 = vadd.s32 %v477_v56, %v475_v49 }
  0x7d   : > { %v1285_v45 = vsel %vm1164_vm15, %v1284_v22, %v1283_v38  ;;  %v2697_v5 = vadd.s32 %v458_v33, %v449_v23  ;;  %v1289_v57 = vsel %vm2648_vm5, 0, %v1287_v30  ;;  %vm1713_vm12 = vcmask 1040384  }
  0x7e   : > { %v1156_v62 = vsel %vm1154_vm3, %v1141_v39, %v1155_v51  ;;  %v1465_v34 = vsel %vm1463_vm4, %v1141_v39, %v1155_v51  ;;  %v1288_v63 = vsel %vm2648_vm5, %v2384_v16, %v1285_v45  ;;  %v480_v52 = vadd.s32 %v479_v4, %v469_v41 }
  0x7f   : > { %v2693_v21 = vsel %vm1153_vm6, %v1156_v62, %v1159_v54  ;;  %v1469_v6 = vsel %vm1462_vm7, %v1465_v34, %v1468_v35  ;;  %v1290_v2 = vmul.f32 %v1288_v63, %v1288_v63  ;;  %v482_v13 = vmul.u32 %v2586_v3, %v2638_v58 }
  0x80   : > { %v1470_v7 = vsel %vm1150_vm8, nan, %v1469_v6  ;;  %v481_v60 = vadd.s32 %v480_v52, %v471_v37  ;;  %v378_v40 = vperm.slane %v374_v18, 0  ;;  %vm484_vm13 = vc.u32 %v2697_v5, %v2681_v55 }
  0x81   : > { %v2701_v53 = vrot.slane %v1470_v7, 2  ;;  %v1291_v20 = vmul.f32 -0.001358992, %v1290_v2  ;;  %v1298_v10 = vmul.f32 -0.00019511016, %v1290_v2  ;;  %v1306_v12 = vadd.s32 3, %v1289_v57 }
  0x82   : > { %v485_v9 = vadd.s32 1, %v481_v60  ;;  %v2712_v8 = vmul.f32 %v378_v40, %v2378_v14  ;;  %v1615_v32 = vand.u32 3, %v1289_v57  ;;  %vm1305_vm5 = vweird.f32 %v2384_v16 }
  0x83   : > { %v1666_v0 = vpack.c.bf16 %v2701_v53, %v2701_v53  ;;  %v1292_v11 = vadd.f32 0.041655596, %v1291_v20  ;;  %v1299_v36 = vadd.f32 0.008332121, %v1298_v10  ;;  %v1307_v30 = vand.u32 3, %v1306_v12 }
  0x84   : > { %v486_v3 = vsel %vm484_vm13, %v485_v9, %v481_v60  ;;  %v547_v58 = vand.u32 2139095040, %v2712_v8  ;;  %vm1620_vm0 = vcmp.eq.s32.totalorder %v1615_v32, 2  ;;  %vm1616_vm2 = vcmp.lt.s32.totalorder %v1615_v32, 2 }
  0x85   : > { %v2715_v19 = vsel %vm1713_vm12, %v1666_v0, 0  ;;  %v1293_v24 = vmul.f32 %v1292_v11, %v1290_v2  ;;  %v1300_v26 = vmul.f32 %v1299_v36, %v1290_v2  ;;  %v487_v29 = vadd.s32 %v486_v3, %v482_v13 }
  0x86   : > { %1726 = vmatpush.bf16.msra.mxu0 %v2715_v19  ;;  %v548_v38 = vshrl.u32 %v547_v58, 23  ;;  %vm1308_vm14 = vcmp.lt.s32.totalorder %v1307_v30, 2  ;;  %vm1312_vm15 = vcmp.eq.s32.totalorder %v1307_v30, 2  ;;  %vm1309_vm1 = vcmp.eq.s32.totalorder %v1307_v30, 0 }
  0x87   : > { %v1294_v28 = vadd.f32 -0.4999988, %v1293_v24  ;;  %v1301_v39 = vadd.f32 -0.16666654, %v1300_v26  ;;  %v488_v14 = vadd.s32 536870912, %v487_v29  ;;  %vm1617_vm3 = vcmp.eq.s32.totalorder %v1615_v32, 0 }
  0x88   : > { %v2174_v31 = vadd.s32 4294967169, %v548_v38  ;;  %v544_v51 = vand.u32 2147483647, %v2712_v8  ;;  %vm391_vm7 = vcmp.lt.s32.totalorder %v2387_v17, 0  ;;  %v483_v40 = vadd.s32 %v2681_v55, %v2697_v5 }
  0x89   : > { %v1295_v27 = vmul.f32 %v1294_v28, %v1290_v2  ;;  %v1302_v23 = vmul.f32 %v1301_v39, %v1290_v2  ;;  %v2719_v41 = vshrl.u32 %v488_v14, 30  ;;  %vm2751_vm10 = vcmp.le.f32.partialorder %v389_v61, 0.7853982 }
  0x8a   : > { %v554_v47 = vadd.s32 1, %v2174_v31  ;;  %v551_v6 = vand.u32 8388607, %v544_v51 }
  0x8b   : > { %v1296_v43 = vadd.f32 1.0, %v1295_v27  ;;  %v1303_v25 = vadd.f32 1.0, %v1302_v23  ;;  %v490_v49 = vshll.u32 %v2719_v41, 30 }
  0x8c   : > { %vm555_vm4 = vcmp.gt.s32.totalorder %v554_v47, 0  ;;  %v552_v0 = vor.u32 8388608, %v551_v6 }
  0x8d   : > { %v1304_v22 = vmul.f32 %v1303_v25, %v1288_v63  ;;  %v1313_v33 = vxor.u32 2147483648, %v1296_v43  ;;  %v491_v45 = vsub.s32 %v487_v29, %v490_v49  ;;  %v556_v56 = vsel %vm555_vm4, %v554_v47, 0 }
  0x8e   : > { %v558_v57 = vand.u32 31, %v556_v56  ;;  %v2744_v3 = vshrl.u32 %v556_v56, 5  ;;  %v513_v29 = vsub.s32 4, %v2719_v41  ;;  %v2757_v38 = vshll.u32 %v552_v0, 8 }
  0x8f   : > { %v1310_v54 = vxor.u32 2147483648, %v1304_v22  ;;  %v1314_v35 = vsel %vm1312_vm15, %v1313_v33, %v1304_v22  ;;  %v1622_v37 = vsel %vm1620_vm0, %v1313_v33, %v1304_v22  ;;  %vm492_vm6 = vcmp.lt.s32.totalorder %v491_v45, 0 }
  0x90   : > { %v493_v34 = vsub.s32 0, %v491_v45  ;;  %v559_v16 = vsub.s32 32, %v558_v57  ;;  %v561_v11 = vshll.u32 %v2294_v42, %v558_v57  ;;  %v564_v36 = vshll.u32 %v2295_v44, %v558_v57 }
  0x91   : > { %v1311_v18 = vsel %vm1309_vm1, %v1296_v43, %v1310_v54  ;;  %v1619_v62 = vsel %vm1617_vm3, %v1296_v43, %v1310_v54  ;;  %v567_v55 = vshll.u32 %v2296_v46, %v558_v57  ;;  %v570_v30 = vshll.u32 %v2297_v48, %v558_v57 }
  0x92   : > { %v1315_v63 = vsel %vm1308_vm14, %v1311_v18, %v1314_v35  ;;  %v1623_v4 = vsel %vm1616_vm2, %v1619_v62, %v1622_v37  ;;  %v494_v52 = vsel %vm492_vm6, %v493_v34, %v491_v45  ;;  %v562_v9 = vshrl.u32 %v2295_v44, %v559_v16 }
  0x93   : > { %v2727_v2 = vsel %vm1305_vm5, nan, %v1315_v63  ;;  %v1624_v7 = vsel %vm1305_vm5, nan, %v1623_v4  ;;  %v495_v10 = vclz %v494_v52  ;;  %v565_v24 = vshrl.u32 %v2296_v46, %v559_v16 }
  0x94   : > { %v2729_v20 = vrot.slane %v1624_v7, 2  ;;  %v568_v5 = vshrl.u32 %v2297_v48, %v559_v16  ;;  %v573_v32 = vshll.u32 %v2298_v50, %v558_v57  ;;  %v563_v23 = vor.u32 %v562_v9, %v561_v11 }
  0x95   : > { %v2172_v13 = vadd.s32 4294967294, %v495_v10  ;;  %v566_v14 = vor.u32 %v565_v24, %v564_v36  ;;  %v571_v43 = vshrl.u32 %v2298_v50, %v559_v16  ;;  %v574_v25 = vshrl.u32 %v2299_v59, %v559_v16 }
  0x96   : > { %v1667_v60 = vpack.c.bf16 %v2729_v20, %v2729_v20  ;;  %v569_v31 = vor.u32 %v568_v5, %v567_v55  ;;  %vm576_vm11 = vcmp.lt.s32.totalorder %v2744_v3, 1  ;;  %v514_v48 = vsel %vm391_vm7, %v513_v29, %v2719_v41 }
  0x97   : > { %vm2173_vm9 = vcmp.lt.s32.totalorder %v2172_v13, 0  ;;  %v572_v22 = vor.u32 %v571_v43, %v570_v30  ;;  %v575_v33 = vor.u32 %v574_v25, %v573_v32  ;;  %vm578_vm13 = vcmp.lt.s32.totalorder %v2744_v3, 3 }
  0x98   : > { %v2739_v12 = vsel %vm1713_vm12, %v1667_v60, 0  ;;  %v498_v26 = vsel %vm2173_vm9, 0, %v2172_v13  ;;  %vm579_vm12 = vcmp.lt.s32.totalorder %v2744_v3, 4  ;;  %v593_v49 = vand.u32 65535, %v2757_v38 }
  0x99   : > { %1745 = vmatpush.bf16.msra.mxu1 %v2739_v12  ;;  %v499_v58 = vsub.s32 32, %v498_v26  ;;  %v500_v28 = vshll.u32 %v491_v45, %v498_v26  ;;  %v503_v39 = vsub.s32 4294967266, %v498_v26  ;;  %vm577_vm14 = vcmp.lt.s32.totalorder %v2744_v3, 2 }
  0x9a   : > { %v584_v59 = vsel %vm576_vm11, %v563_v23, %v566_v14  ;;  %v2773_v35 = vsel %vm2751_vm10, 0, %v514_v48  ;;  %v585_v41 = vsel %vm579_vm12, %v572_v22, 920167782  ;;  %v588_v37 = vsel %vm576_vm11, %v566_v14, %v569_v31 }
  0x9b   : > { %v501_v46 = vshrl.u32 %v483_v40, %v499_v58  ;;  %v504_v27 = vadd.s32 127, %v503_v39  ;;  %v594_v45 = vshrl.u32 %v2757_v38, 16  ;;  %v560_v18 = vshrl.u32 %v2294_v42, %v559_v16 }
  0x9c   : > { %v586_v62 = vsel %vm578_vm13, %v569_v31, %v585_v41  ;;  %v589_v34 = vsel %vm579_vm12, %v575_v33, 1326507024  ;;  %v533_v42 = vadd.s32 3, %v2773_v35  ;;  %v581_v10 = vsel %vm579_vm12, %v569_v31, 2102212464 }
  0x9d   : > { %v502_v61 = vor.u32 %v501_v46, %v500_v28  ;;  %v505_v47 = vshll.u32 %v504_v27, 23  ;;  %v587_v63 = vsel %vm577_vm14, %v584_v59, %v586_v62  ;;  %v590_v4 = vsel %vm578_vm13, %v572_v22, %v589_v34 }
  0x9e   : > { %v591_v7 = vsel %vm577_vm14, %v588_v37, %v590_v4  ;;  %v617_v52 = vand.u32 65535, %v587_v63  ;;  %v618_v57 = vshrl.u32 %v587_v63, 16  ;;  %v580_v40 = vsel %vm576_vm11, %v560_v18, %v563_v23 }
  0x9f   : > { %v506_v54 = vor.u32 4788187, %v505_v47  ;;  %v509_v50 = vcvt.s32.f32 %v502_v61  ;;  %v595_v16 = vand.u32 65535, %v591_v7  ;;  %v596_v60 = vshrl.u32 %v591_v7, 16 }
  0xa0   : > { %v620_v0 = vmul.u32 %v618_v57, %v593_v49  ;;  %v621_v11 = vmul.u32 %v617_v52, %v594_v45  ;;  %v619_v26 = vmul.u32 %v617_v52, %v593_v49  ;;  %v582_v5 = vsel %vm578_vm13, %v566_v14, %v581_v10 }
  0xa1   : > { %v507_v56 = vand.u32 2147483647, %v506_v54  ;;  %v597_v36 = vmul.u32 %v595_v16, %v593_v49  ;;  %v598_v9 = vmul.u32 %v596_v60, %v593_v49  ;;  %v599_v24 = vmul.u32 %v595_v16, %v594_v45 }
  0xa2   : > { %v600_v58 = vmul.u32 %v596_v60, %v594_v45  ;;  %v623_v28 = vshll.u32 %v620_v0, 16  ;;  %v622_v32 = vmul.u32 %v618_v57, %v594_v45  ;;  %v624_v23 = vshrl.u32 %v620_v0, 16 }
  0xa3   : > { %v510_v6 = vmul.f32 %v509_v50, %v507_v56  ;;  %v601_v29 = vshll.u32 %v598_v9, 16  ;;  %v603_v30 = vshll.u32 %v599_v24, 16  ;;  %v602_v27 = vshrl.u32 %v598_v9, 16 }
  0xa4   : > { %v625_v31 = vshll.u32 %v621_v11, 16  ;;  %vm627_vm0 = vc.u32 %v619_v26, %v623_v28  ;;  %v629_v25 = vadd.s32 %v623_v28, %v619_v26  ;;  %v604_v59 = vshrl.u32 %v599_v24, 16 }
  0xa5   : > { %v511_v13 = vxor.u32 2147483648, %v510_v6  ;;  %vm605_vm15 = vc.u32 %v597_v36, %v601_v29  ;;  %v607_v43 = vadd.s32 %v601_v29, %v597_v36  ;;  %v628_v48 = vsel %vm627_vm0, 1, %v2293_v1 }
  0xa6   : > { %v606_v14 = vsel %vm605_vm15, 1, %v2293_v1  ;;  %v630_v44 = vadd.s32 %v628_v48, %v622_v32  ;;  %vm631_vm2 = vc.u32 %v629_v25, %v625_v31  ;;  %v626_v37 = vshrl.u32 %v621_v11, 16 }
  0xa7   : > { %v512_v55 = vsel %vm391_vm7, %v511_v13, %v510_v6  ;;  %v608_v22 = vadd.s32 %v606_v14, %v600_v58  ;;  %vm609_vm1 = vc.u32 %v607_v43, %v603_v30  ;;  %v632_v50 = vsel %vm631_vm2, 1, %v2293_v1 }
  0xa8   : > { %v515_v39 = vsel %vm2751_vm10, %v2387_v17, %v512_v55  ;;  %v610_v54 = vsel %vm609_vm1, 1, %v2293_v1  ;;  %v634_v45 = vadd.s32 %v632_v50, %v630_v44  ;;  %v583_v62 = vsel %vm577_vm14, %v580_v40, %v582_v5 }
  0xa9   : > { %v517_v46 = vmul.f32 %v515_v39, %v515_v39  ;;  %v612_v41 = vadd.s32 %v610_v54, %v608_v22  ;;  %v633_v63 = vadd.s32 %v629_v25, %v625_v31  ;;  %v534_v52 = vand.u32 3, %v533_v42 }
  0xaa   : > { %v635_v4 = vadd.s32 %v634_v45, %v624_v23  ;;  %v843_v57 = vand.u32 3, %v2773_v35  ;;  %v637_v13 = vmul.u32 %v2757_v38, %v583_v62  ;;  %v1161_v40 = vsel %vm1150_vm8, nan, %v2693_v21  ;;  %v1626_v21 = vld.sshfl [vmem:[#allocation1] sm:$0xff pattern:$0x73625140] }
  0xab   : > { %v518_v61 = vmul.f32 -0.001358992, %v517_v46  ;;  %v525_v47 = vmul.f32 -0.00019511016, %v517_v46  ;;  %v613_v34 = vadd.s32 %v612_v41, %v602_v27  ;;  %vm539_vm4 = vcmp.eq.s32.totalorder %v534_v52, 2 }
  0xac   : > { %v636_v16 = vadd.s32 %v635_v4, %v626_v37  ;;  %vm848_vm5 = vcmp.eq.s32.totalorder %v843_v57, 2  ;;  %vm535_vm6 = vcmp.lt.s32.totalorder %v534_v52, 2  ;;  %vm536_vm7 = vcmp.eq.s32.totalorder %v534_v52, 0  ;;  %v1672_v52 = vld [vmem:[%s2933_s2] sm:$0xff] }
  0xad   : > { %v519_v33 = vadd.f32 0.041655596, %v518_v61  ;;  %v526_v49 = vadd.f32 0.008332121, %v525_v47  ;;  %v614_v10 = vadd.s32 %v613_v34, %v604_v59  ;;  %vm844_vm9 = vcmp.lt.s32.totalorder %v843_v57, 2  ;;  %1678 = vperm.xlu1 %2273, %v1672_v52  }
  0xae   : > { %v640_v0 = vadd.s32 1, %v636_v16  ;;  %vm845_vm10 = vcmp.eq.s32.totalorder %v843_v57, 0  ;;  %vm532_vm11 = vweird.f32 %v2387_v17  ;;  %v1644_v29 = vrot.slane %v1161_v40, 6 }
  0xaf   : > { %v520_v56 = vmul.f32 %v519_v33, %v517_v46  ;;  %v527_v18 = vmul.f32 %v526_v49, %v517_v46  ;;  %vm639_vm3 = vc.u32 %v614_v10, %v633_v63  ;;  %vm1654_vm8 = vcmask 1041408  }
  0xb0   : > { %v641_v3 = vsel %vm639_vm3, %v640_v0, %v636_v16  ;;  %vm1657_vm12 = vcmask 1045504   ;;  %v638_v33 = vadd.s32 %v633_v63, %v614_v10  ;;  %vm546_vm15 = vcmp.lt.s32.totalorder %v2712_v8, 0 }
  0xb1   : > { %v521_v6 = vadd.f32 -0.4999988, %v520_v56  ;;  %v528_v7 = vadd.f32 -0.16666654, %v527_v18  ;;  %v642_v35 = vadd.s32 %v641_v3, %v637_v13  ;;  %vm1706_vm0 = vcmask 146432  }
  0xb2   : > { %vm545_vm1 = vcmp.le.f32.partialorder %v544_v51, 0.7853982 }
  0xb3   : > { %v522_v1 = vmul.f32 %v521_v6, %v517_v46  ;;  %v529_v60 = vmul.f32 %v528_v7, %v517_v46  ;;  %v643_v55 = vadd.s32 536870912, %v642_v35  ;;  %v1675_v7 = vld [vmem:[%s2933_s2 + $0x18] sm:$0xff] }
  0xb4   : > { %1693 = vperm.xlu0 %2272, %v1675_v7  }
  0xb5   : > { %v523_v11 = vadd.f32 1.0, %v522_v1  ;;  %v530_v36 = vadd.f32 1.0, %v529_v60  ;;  %v644_v28 = vshrl.u32 %v643_v55, 30 }
  0xb7   : > { %v531_v42 = vmul.f32 %v530_v36, %v515_v39  ;;  %v540_v9 = vxor.u32 2147483648, %v523_v11  ;;  %v645_v46 = vshll.u32 %v644_v28, 30  ;;  %v668_v4 = vsub.s32 4, %v644_v28  ;;  %v1673_v36 = vld [vmem:[%s2933_s2 + $0x8] sm:$0xff] }
  0xb8   : > { %1683 = vperm.xlu1 %2273, %v1673_v36  }
  0xb9   : > { %v537_v24 = vxor.u32 2147483648, %v531_v42  ;;  %v541_v38 = vsel %vm539_vm4, %v540_v9, %v531_v42  ;;  %v850_v26 = vsel %vm848_vm5, %v540_v9, %v531_v42  ;;  %v646_v31 = vsub.s32 %v642_v35, %v645_v46 }
  0xba   : > { %v669_v57 = vsel %vm546_vm15, %v668_v4, %v644_v28 }
  0xbb   : > { %v538_v5 = vsel %vm536_vm7, %v523_v11, %v537_v24  ;;  %v847_v58 = vsel %vm845_vm10, %v523_v11, %v537_v24  ;;  %vm647_vm13 = vcmp.lt.s32.totalorder %v646_v31, 0  ;;  %v648_v47 = vsub.s32 0, %v646_v31  ;;  %v1774_v11 = vld [vmem:[%s2935_s4] sm:$0xff] }
  0xbc   : > { %v542_v30 = vsel %vm535_vm6, %v538_v5, %v541_v38  ;;  %v851_v15 = vsel %vm844_vm9, %v847_v58, %v850_v26  ;;  %v671_v51 = vsel %vm545_vm1, 0, %v669_v57  ;;  %1780 = vperm.xlu0 %2272, %v1774_v11   ;;  %v2250_v26 = vld [vmem:[%s2932_s1 + $0x8] sm:$0xff]  ;;  %vm687_vm9 = vweird.f32 %v2712_v8 }
  0xbd   : > { %v543_v39 = vsel %vm532_vm11, nan, %v542_v30  ;;  %v852_v32 = vsel %vm532_vm11, nan, %v851_v15  ;;  %v649_v48 = vsel %vm647_vm13, %v648_v47, %v646_v31  ;;  %v688_v3 = vadd.s32 3, %v671_v51  ;;  %v1984_v15 = vld [vmem:[%s2938_s7 + $0x18] sm:$0xff] }
  0xbe   : > { %v1632_v27 = vrot.slane %v543_v39, 6  ;;  %v1638_v23 = vrot.slane %v852_v32, 2  ;;  %v650_v22 = vclz %v649_v48  ;;  %v997_v38 = vand.u32 3, %v671_v51  ;;  %v1981_v48 = vld [vmem:[%s2938_s7] sm:$0xff] }
  0xbf   : > { %v689_v24 = vand.u32 3, %v688_v3  ;;  %vm1808_vm10 = vcmask 261120  }
  0xc0   : > { %v1655_v43 = vsel %vm1654_vm8, %v1626_v21, %v1632_v27  ;;  %v1660_v25 = vsel %vm1654_vm8, %v1638_v23, %v1644_v29  ;;  %v2175_v44 = vadd.s32 4294967294, %v650_v22  ;;  %vm1002_vm3 = vcmp.eq.s32.totalorder %v997_v38, 2  ;;  %v1775_v21 = vld [vmem:[%s2935_s4 + $0x8] sm:$0xff] }
  0xc1   : > { %v1658_v17 = vsel %vm1657_vm12, %v1655_v43, %v1638_v23  ;;  %v1662_v61 = vsel %vm1657_vm12, %v1660_v25, %v2701_v53  ;;  %vm694_vm2 = vcmp.eq.s32.totalorder %v689_v24, 2  ;;  %vm690_vm4 = vcmp.lt.s32.totalorder %v689_v24, 2  ;;  %1785 = vperm.xlu1 %2273, %v1775_v21  }
  0xc2   : > { %v1664_v14 = vpack.c.bf16 %v1662_v61, %v1658_v17  ;;  %vm2176_vm14 = vcmp.lt.s32.totalorder %v2175_v44, 0  ;;  %vm691_vm5 = vcmp.eq.s32.totalorder %v689_v24, 0  ;;  %vm999_vm6 = vcmp.eq.s32.totalorder %v997_v38, 0  ;;  %v1627_v17 = vld.sshfl [vmem:[#allocation1 + $0x8] sm:$0xff pattern:$0x73625140] }
  0xc3   : > { %v653_v49 = vsel %vm2176_vm14, 0, %v2175_v44  ;;  %vm998_vm7 = vcmp.lt.s32.totalorder %v997_v38, 2 }
  0xc4   : > { %1727 = vmatpush.bf16.msra.mxu0 %v1664_v14  ;;  %v654_v54 = vsub.s32 32, %v653_v49  ;;  %v655_v50 = vshll.u32 %v646_v31, %v653_v49  ;;  %v658_v59 = vsub.s32 4294967266, %v653_v49  ;;  %2002 = vperm.xlu0 %2272, %v1984_v15   ;;  %v1645_v31 = vrot.slane %v2727_v2, 6 }
  0xc6   : > { %v656_v41 = vshrl.u32 %v638_v33, %v654_v54  ;;  %v659_v37 = vadd.s32 127, %v658_v59 }
  0xc8   : > { %1895 = vmatpush.bf16.msrb.mxu0 %v2715_v19  ;;  %v657_v45 = vor.u32 %v656_v41, %v655_v50  ;;  %v660_v53 = vshll.u32 %v659_v37, 23  ;;  %v2825_v19 = vld [vmem:[%s2932_s1] sm:$0xff] }
  0xc9   : > { %2203 = vmatmul.msk.bf16.vlgmr.msra.gmra.mxu0 %vm1706_vm0, %v2825_v19  ;;  %1987 = vperm.xlu1 %2273, %v1981_v48  }
  0xca   : > { %v661_v56 = vor.u32 4788187, %v660_v53  ;;  %v664_v18 = vcvt.s32.f32 %v657_v45 }
  0xcc   : > { %1896 = vmatpush.bf16.msrb.mxu0 %v1664_v14  ;;  %v662_v62 = vand.u32 2147483647, %v661_v56  ;;  %v2026_v14 = vld [vmem:[%s2940_s9] sm:$0x7] }
  0xcd   : > { %2029 = vperm.xlu0 %2272, %v2026_v14  }
  0xce   : > { %v665_v34 = vmul.f32 %v664_v18, %v662_v62 }
  0xd0   : > { %v666_v63 = vxor.u32 2147483648, %v665_v34 }
  0xd2   : > { %v667_v6 = vsel %vm546_vm15, %v666_v63, %v665_v34 }
  0xd3   : > { %v670_v10 = vsel %vm545_vm1, %v2712_v8, %v667_v6  ;;  %vm2102_vm1 = vcmask 1043456  }
  0xd4   : > { %v672_v16 = vmul.f32 %v670_v10, %v670_v10 }
  0xd6   : > { %v673_v1 = vmul.f32 -0.001358992, %v672_v16  ;;  %v680_v60 = vmul.f32 -0.00019511016, %v672_v16 }
  0xd8   : > { %v674_v13 = vadd.f32 0.041655596, %v673_v1  ;;  %v681_v0 = vadd.f32 0.008332121, %v680_v60  ;;  %v2252_v1 = vld [vmem:[%s2934_s3 + $0x8] sm:$0xff]  ;;  %v1776_v60 = vld [vmem:[%s2935_s4 + $0x10] sm:$0xff] }
  0xd9   : > { %2204 = vmatmul.msk.bf16.gmra.mxu0 %vm1706_vm0, %v2250_v26  ;;  %1790 = vperm.xlu2 %2274, %v1776_v60  }
  0xda   : > { %v675_v40 = vmul.f32 %v674_v13, %v672_v16  ;;  %v682_v42 = vmul.f32 %v681_v0, %v672_v16 }
  0xdc   : > { %v676_v9 = vadd.f32 -0.4999988, %v675_v40  ;;  %v683_v35 = vadd.f32 -0.16666654, %v682_v42 }
  0xde   : > { %v677_v55 = vmul.f32 %v676_v9, %v672_v16  ;;  %v684_v5 = vmul.f32 %v683_v35, %v672_v16  ;;  %v1777_v9 = vld [vmem:[%s2935_s4 + $0x18] sm:$0xff] }
  0xe0   : > { %v678_v58 = vadd.f32 1.0, %v677_v55  ;;  %v685_v28 = vadd.f32 1.0, %v684_v5  ;;  %v1983_v55 = vld [vmem:[%s2938_s7 + $0x10] sm:$0xff]  ;;  %v1982_v5 = vld [vmem:[%s2938_s7 + $0x8] sm:$0xff] }
  0xe1   : > { %1795 = vperm.xlu2 %2274, %v1777_v9  }
  0xe2   : > { %v686_v29 = vmul.f32 %v685_v28, %v670_v10  ;;  %v695_v30 = vxor.u32 2147483648, %v678_v58  ;;  %v2251_v10 = vld [vmem:[%s2934_s3] sm:$0xff] }
  0xe4   : > { %v692_v39 = vxor.u32 2147483648, %v686_v29  ;;  %v696_v32 = vsel %vm694_vm2, %v695_v30, %v686_v29  ;;  %v1004_v46 = vsel %vm1002_vm3, %v695_v30, %v686_v29 }
  0xe6   : > { %v693_v27 = vsel %vm691_vm5, %v678_v58, %v692_v39  ;;  %v1001_v23 = vsel %vm999_vm6, %v678_v58, %v692_v39 }
  0xe7   : > { %v697_v43 = vsel %vm690_vm4, %v693_v27, %v696_v32  ;;  %v1005_v25 = vsel %vm998_vm7, %v1001_v23, %v1004_v46 }
  0xe8   : > { %v698_v61 = vsel %vm687_vm9, nan, %v697_v43  ;;  %v1006_v47 = vsel %vm687_vm9, nan, %v1005_v25 }
  0xe9   : > { %v1633_v22 = vrot.slane %v698_v61, 6  ;;  %v1639_v44 = vrot.slane %v1006_v47, 2  ;;  %v1689_v41 = vpop.permute.xlu0 %1688  ;;  %1997 = vperm.xlu2 %2274, %v1983_v55  }
  0xeb   : > { %v1656_v8 = vsel %vm1654_vm8, %v1627_v17, %v1633_v22  ;;  %v1661_v33 = vsel %vm1654_vm8, %v1639_v44, %v1645_v31  ;;  %v2255_v22 = vld [vmem:[%s2937_s6] sm:$0xff] }
  0xec   : > { %v1659_v2 = vsel %vm1657_vm12, %v1656_v8, %v1639_v44  ;;  %v1663_v49 = vsel %vm1657_vm12, %v1661_v33, %v2729_v20  ;;  %v2253_v44 = vld [vmem:[%s2936_s5] sm:$0xff]  ;;  %2227 = vmatmul.msk.bf16.vlgmr.msrb.gmra.mxu0 %vm1706_vm0, %v2255_v22 }
  0xed   : > { %v1665_v54 = vpack.c.bf16 %v1663_v49, %v1659_v2  ;;  %v2256_v2 = vld [vmem:[%s2937_s6 + $0x8] sm:$0xff] }
  0xee   : > { %v2254_v49 = vld [vmem:[%s2936_s5 + $0x8] sm:$0xff] }
  0xef   : > { %1746 = vmatpush.bf16.msra.mxu1 %v1665_v54 }
  0xf1   : > { %1992 = vperm.xlu2 %2274, %v1982_v5  }
  0xf2   : > { %2205 = vmatmul.msk.bf16.vlgmr.msra.gmra.mxu1 %vm1706_vm0, %v2825_v19 }
  0xf3   : > { %1914 = vmatpush.bf16.msrb.mxu1 %v2739_v12 }
  0xf7   : > { %1915 = vmatpush.bf16.msrb.mxu1 %v1665_v54 }
  0xfc   : > { %2228 = vmatmul.msk.bf16.gmra.mxu0 %vm1706_vm0, %v2256_v2 }
 0x102   : > { %2206 = vmatmul.msk.bf16.gmra.mxu1 %vm1706_vm0, %v2250_v26 }
 0x112   : > { %2229 = vmatmul.msk.bf16.vlgmr.msrb.gmra.mxu1 %vm1706_vm0, %v2255_v22 }
 0x11f   : > { %v1679_v37 = vpop.permute.xlu1 %1678 }
 0x122   : > { %2230 = vmatmul.msk.bf16.gmra.mxu1 %vm1706_vm0, %v2256_v2 }
 0x126   : > { %v1694_v53 = vpop.permute.xlu0 %1693 }
 0x12a   : > { %v1684_v18 = vpop.permute.xlu1 %1683 }
 0x12e   : > { %v1781_v23 = vpop.permute.xlu0 %1780 }
 0x133   : > { %v1791_v29 = vpop.permute.xlu2 %1790  ;;  %v1786_v15 = vpop.permute.xlu1 %1785 }
 0x13b   : > { %v1796_v39 = vpop.permute.xlu2 %1795 }
 0x146   : > { %v1729_v50 = vpop.f32.mrf.mxu0 }
 0x147   : > { %v1730_v4 = vadd.f32 %v1729_v50, %v1679_v37 }
 0x149   : > { %v1758_v19 = vmax.f32 %v1730_v4, 0.0 }
 0x14e   : > { %v1731_v59 = vpop.f32.mrf.mxu0 }
 0x14f   : > { %v1732_v20 = vadd.f32 %v1731_v59, %v1684_v18 }
 0x151   : > { %v1760_v6 = vmax.f32 %v1732_v20, 0.0 }
 0x153   : > { %v1770_v57 = vpack.c.bf16 %v1760_v6, %v1758_v19 }
 0x156   : > { %v1734_v45 = vpop.f32.mrf.mxu0 }
 0x157   : > { %v1735_v56 = vadd.f32 %v1734_v45, %v1689_v41 }
 0x159   : > { %v1762_v63 = vmax.f32 %v1735_v56, 0.0 }
 0x15e   : > { %v1736_v62 = vpop.f32.mrf.mxu0 }
 0x15f   : > { %v1737_v34 = vadd.f32 %v1736_v62, %v1694_v53 }
 0x161   : > { %v1764_v12 = vmax.f32 %v1737_v34, 0.0 }
 0x163   : > { %v1772_v7 = vpack.c.bf16 %v1764_v12, %v1762_v63 }
 0x165   : > { %1821 = vmatpush.bf16.msra.mxu2 %v1772_v7  ;;  %v1998_v7 = vpop.permute.xlu2 %1997 }
 0x169   : > { %1822 = vmatpush.bf16.msra.mxu2 %v1770_v57  ;;  %v1898_v34 = vpop.f32.mrf.mxu0 }
 0x16c   : > { %2215 = vmatmul.msk.bf16.vlgmr.msra.gmra.mxu2 %vm1808_vm10, %v2251_v10 }
 0x16f   : > { %v1748_v52 = vpop.f32.mrf.mxu1 }
 0x170   : > { %v1749_v3 = vadd.f32 %v1748_v52, %v1679_v37 }
 0x171   : > { %v1900_v63 = vpop.f32.mrf.mxu0 }
 0x172   : > { %v1759_v38 = vmax.f32 %v1749_v3, 0.0 }
 0x177   : > { %v1750_v16 = vpop.f32.mrf.mxu1 }
 0x178   : > { %v1751_v11 = vadd.f32 %v1750_v16, %v1684_v18 }
 0x179   : > { %v1903_v6 = vpop.f32.mrf.mxu0 }
 0x17a   : > { %v1761_v35 = vmax.f32 %v1751_v11, 0.0 }
 0x17c   : > { %2216 = vmatmul.msk.bf16.gmra.mxu2 %vm1808_vm10, %v2252_v1  ;;  %v1771_v26 = vpack.c.bf16 %v1761_v35, %v1759_v38 }
 0x17f   : > { %v1753_v51 = vpop.f32.mrf.mxu1 }
 0x180   : > { %v1754_v13 = vadd.f32 %v1753_v51, %v1689_v41 }
 0x182   : > { %v1763_v40 = vmax.f32 %v1754_v13, 0.0  ;;  %v2003_v13 = vpop.permute.xlu0 %2002 }
 0x187   : > { %v1755_v0 = vpop.f32.mrf.mxu1 }
 0x188   : > { %v1756_v36 = vadd.f32 %v1755_v0, %v1694_v53  ;;  %v1993_v0 = vpop.permute.xlu2 %1992 }
 0x18a   : > { %v1765_v42 = vmax.f32 %v1756_v36, 0.0  ;;  %v2030_v2 = vpop.permute.xlu0 %2029 }
 0x18c   : > { %v1773_v24 = vpack.c.bf16 %v1765_v42, %v1763_v40  ;;  %v1988_v40 = vpop.permute.xlu1 %1987 }
 0x18e   : > { %1840 = vmatpush.bf16.msra.mxu3 %v1773_v24 }
 0x18f   : > { %v1917_v11 = vpop.f32.mrf.mxu1 }
 0x192   : > { %1841 = vmatpush.bf16.msra.mxu3 %v1771_v26 }
 0x195   : > { %2217 = vmatmul.msk.bf16.vlgmr.msra.gmra.mxu3 %vm1808_vm10, %v2251_v10  ;;  %v1905_v10 = vpop.f32.mrf.mxu0 }
 0x1a5   : > { %2218 = vmatmul.msk.bf16.gmra.mxu3 %vm1808_vm10, %v2252_v1 }
 0x1ef   : > { %v1824_v58 = vpop.f32.mrf.mxu2 }
 0x1f0   : > { %v1825_v31 = vadd.f32 %v1824_v58, %v1781_v23  ;;  %v1919_v58 = vpop.f32.mrf.mxu1 }
 0x1f2   : > { %v1853_v47 = vmax.f32 %v1825_v31, 0.0 }
 0x1f7   : > { %v1826_v28 = vpop.f32.mrf.mxu2 }
 0x1f8   : > { %v1827_v46 = vadd.f32 %v1826_v28, %v1786_v15  ;;  %v2021_v28 = vld [vmem:[%s2939_s8] sm:$0x3] }
 0x1fa   : > { %v1855_v17 = vmax.f32 %v1827_v46, 0.0 }
 0x1fc   : > { %v1865_v48 = vpack.c.bf16 %v1855_v17, %v1853_v47 }
 0x1ff   : > { %v1829_v30 = vpop.f32.mrf.mxu2 }
 0x200   : > { %v1830_v21 = vadd.f32 %v1829_v30, %v1791_v29  ;;  %v1922_v30 = vpop.f32.mrf.mxu1 }
 0x202   : > { %v1857_v43 = vmax.f32 %v1830_v21, 0.0 }
 0x207   : > { %v1831_v32 = vpop.f32.mrf.mxu2 }
 0x208   : > { %v1832_v27 = vadd.f32 %v1831_v32, %v1796_v39  ;;  %v1924_v32 = vpop.f32.mrf.mxu1 }
 0x20a   : > { %v1859_v25 = vmax.f32 %v1832_v27, 0.0 }
 0x20c   : > { %v1867_v61 = vpack.c.bf16 %v1859_v25, %v1857_v43 }
 0x20e   : > { %1949 = vmatpush.bf16.msrb.mxu2 %v1867_v61 }
 0x212   : > { %1950 = vmatpush.bf16.msrb.mxu2 %v1865_v48 }
 0x215   : > { %2239 = vmatmul.msk.bf16.vlgmr.msrb.gmra.mxu2 %vm1808_vm10, %v2253_v44 }
 0x218   : > { %v1843_v14 = vpop.f32.mrf.mxu3 }
 0x219   : > { %v1844_v37 = vadd.f32 %v1843_v14, %v1781_v23 }
 0x21b   : > { %v1854_v62 = vmax.f32 %v1844_v37, 0.0 }
 0x220   : > { %v1845_v8 = vpop.f32.mrf.mxu3 }
 0x221   : > { %v1846_v59 = vadd.f32 %v1845_v8, %v1786_v15 }
 0x223   : > { %v1856_v56 = vmax.f32 %v1846_v59, 0.0 }
 0x225   : > { %2240 = vmatmul.msk.bf16.gmra.mxu2 %vm1808_vm10, %v2254_v49  ;;  %v1866_v20 = vpack.c.bf16 %v1856_v56, %v1854_v62 }
 0x228   : > { %v1848_v33 = vpop.f32.mrf.mxu3 }
 0x229   : > { %v1849_v54 = vadd.f32 %v1848_v33, %v1791_v29 }
 0x22b   : > { %v1858_v45 = vmax.f32 %v1849_v54, 0.0 }
 0x230   : > { %v1850_v50 = vpop.f32.mrf.mxu3 }
 0x231   : > { %v1851_v41 = vadd.f32 %v1850_v50, %v1796_v39 }
 0x233   : > { %v1860_v53 = vmax.f32 %v1851_v41, 0.0 }
 0x235   : > { %v1868_v18 = vpack.c.bf16 %v1860_v53, %v1858_v45 }
 0x237   : > { %1968 = vmatpush.bf16.msrb.mxu3 %v1868_v18 }
 0x23b   : > { %1969 = vmatpush.bf16.msrb.mxu3 %v1866_v20 }
 0x23e   : > { %2241 = vmatmul.msk.bf16.vlgmr.msrb.gmra.mxu3 %vm1808_vm10, %v2253_v44 }
 0x24e   : > { %2242 = vmatmul.msk.bf16.gmra.mxu3 %vm1808_vm10, %v2254_v49 }
 0x298   : > { %v1952_v4 = vpop.f32.mrf.mxu2 }
 0x299   : > { %v1953_v51 = vadd.f32 %v1952_v4, %v1898_v34 }
 0x29b   : > { %v2005_v42 = vadd.f32 %v1988_v40, %v1953_v51 }
 0x29d   : > { %v2013_v26 = vmax.f32 %v2005_v42, 0.0 }
 0x2a0   : > { %v1954_v12 = vpop.f32.mrf.mxu2 }
 0x2a1   : > { %v1955_v57 = vadd.f32 %v1954_v12, %v1900_v63 }
 0x2a3   : > { %v2007_v36 = vadd.f32 %v1993_v0, %v1955_v57 }
 0x2a5   : > { %v2015_v24 = vmax.f32 %v2007_v36, 0.0 }
 0x2a7   : > { %v2022_v5 = vpack.c.bf16 %v2015_v24, %v2013_v26 }
 0x2a8   : > { %v1957_v19 = vpop.f32.mrf.mxu2 }
 0x2a9   : > { %v1958_v52 = vadd.f32 %v1957_v19, %v1903_v6 }
 0x2ab   : > { %v2009_v1 = vadd.f32 %v1998_v7, %v1958_v52 }
 0x2ad   : > { %v2017_v9 = vmax.f32 %v2009_v1, 0.0 }
 0x2b0   : > { %v1959_v16 = vpop.f32.mrf.mxu2 }
 0x2b1   : > { %v1960_v60 = vadd.f32 %v1959_v16, %v1905_v10 }
 0x2b3   : > { %v2011_v3 = vadd.f32 %v2003_v13, %v1960_v60 }
 0x2b5   : > { %v2019_v35 = vmax.f32 %v2011_v3, 0.0 }
 0x2b7   : > { %v2024_v38 = vpack.c.bf16 %v2019_v35, %v2017_v9 }
 0x2b9   : > { %2041 = vmatpush.bf16.msra.mxu0 %v2024_v38 }
 0x2bd   : > { %2042 = vmatpush.bf16.msra.mxu0 %v2022_v5 }
 0x2c0   : > { %2243 = vmatmul.msk.bf16.vlgmr.msra.gmra.mxu0 %vm1808_vm10, %v2021_v28 }
 0x2c1   : > { %v1971_v55 = vpop.f32.mrf.mxu3 }
 0x2c2   : > { %v1972_v27 = vadd.f32 %v1971_v55, %v1917_v11 }
 0x2c4   : > { %v2006_v17 = vadd.f32 %v1988_v40, %v1972_v27 }
 0x2c6   : > { %v2014_v22 = vmax.f32 %v2006_v17, 0.0 }
 0x2c9   : > { %v1973_v29 = vpop.f32.mrf.mxu3 }
 0x2ca   : > { %v1974_v39 = vadd.f32 %v1973_v29, %v1919_v58 }
 0x2cc   : > { %v2008_v43 = vadd.f32 %v1993_v0, %v1974_v39 }
 0x2ce   : > { %v2016_v14 = vmax.f32 %v2008_v43, 0.0 }
 0x2d0   : > { %v2023_v44 = vpack.c.bf16 %v2016_v14, %v2014_v22 }
 0x2d1   : > { %v1976_v15 = vpop.f32.mrf.mxu3 }
 0x2d2   : > { %v1977_v21 = vadd.f32 %v1976_v15, %v1922_v30 }
 0x2d4   : > { %v2010_v23 = vadd.f32 %v1998_v7, %v1977_v21 }
 0x2d6   : > { %v2018_v61 = vmax.f32 %v2010_v23, 0.0 }
 0x2d9   : > { %v1978_v46 = vpop.f32.mrf.mxu3 }
 0x2da   : > { %v1979_v31 = vadd.f32 %v1978_v46, %v1924_v32 }
 0x2dc   : > { %v2012_v25 = vadd.f32 %v2003_v13, %v1979_v31 }
 0x2de   : > { %v2020_v47 = vmax.f32 %v2012_v25, 0.0 }
 0x2e0   : > { %v2025_v48 = vpack.c.bf16 %v2020_v47, %v2018_v61 }
 0x2e2   : > { %2054 = vmatpush.bf16.msra.mxu1 %v2025_v48 }
 0x2e6   : > { %2055 = vmatpush.bf16.msra.mxu1 %v2023_v44 }
 0x2e9   : > { %2244 = vmatmul.msk.bf16.vlgmr.msra.gmra.mxu1 %vm1808_vm10, %v2021_v28 }
 0x33d   : > { %v2044_v8 = vpop.f32.mrf.mxu0 }
 0x33e   : > { %v2045_v49 = vadd.f32 %v2044_v8, %v2030_v2 }
 0x340   : > { %v2245_v54 = vmul.f32 -1.442695, %v2045_v49 }
 0x342   : > { %2277 = vpow2.f32 %v2245_v54 }
 0x345   : > { %v2046_v33 = vpop.f32.mrf.mxu0 }
 0x348   : > { %v2278_v50 = vpop.eup %2277 }
 0x349   : > { %v2067_v59 = vadd.f32 1.0, %v2278_v50 }
 0x34b   : > { %2279 = vrcp.f32 %v2067_v59  ;;  %vm2074_vm12 = vweird.f32 %v2067_v59  ;;  %v2080_v10 = vand.u32 2147483648, %v2067_v59  ;;  %v2078_v51 = vand.u32 2147483647, %v2067_v59 }
 0x34d   : > { %v2081_v11 = vor.u32 1.1754944e-38, %v2080_v10  ;;  %vm2079_vm2 = vcmp.eq.f32.partialorder %v2078_v51, 8.507059e+37 }
 0x351   : > { %v2280_v56 = vpop.eup %2279 }
 0x352   : > { %v2070_v20 = vmul.f32 %v2280_v56, %v2067_v59  ;;  %vm2075_vm11 = vweird.f32 %v2280_v56 }
 0x353   : > { %vm2918_vm13 = vmor %vm2074_vm12, %vm2075_vm11 }
 0x354   : > { %v2071_v34 = vsub.f32 1.0, %v2070_v20 }
 0x356   : > { %v2072_v63 = vmul.f32 %v2280_v56, %v2071_v34 }
 0x358   : > { %v2073_v19 = vadd.f32 %v2280_v56, %v2072_v63 }
 0x35a   : > { %v2077_v13 = vsel %vm2918_vm13, %v2280_v56, %v2073_v19 }
 0x35b   : > { %v2082_v40 = vsel %vm2079_vm2, %v2081_v11, %v2077_v13 }
 0x366   : > { %v2057_v41 = vpop.f32.mrf.mxu1 }
 0x367   : > { %v2058_v37 = vadd.f32 %v2057_v41, %v2030_v2 }
 0x369   : > { %v2246_v45 = vmul.f32 -1.442695, %v2058_v37 }
 0x36b   : > { %2281 = vpow2.f32 %v2246_v45 }
 0x36e   : > { %v2059_v53 = vpop.f32.mrf.mxu1 }
 0x371   : > { %v2282_v18 = vpop.eup %2281 }
 0x372   : > { %v2068_v62 = vadd.f32 1.0, %v2282_v18 }
 0x374   : > { %2283 = vrcp.f32 %v2068_v62  ;;  %v2095_v7 = vand.u32 2147483648, %v2068_v62  ;;  %v2093_v57 = vand.u32 2147483647, %v2068_v62  ;;  %vm2089_vm14 = vweird.f32 %v2068_v62 }
 0x376   : > { %v2096_v60 = vor.u32 1.1754944e-38, %v2095_v7  ;;  %vm2094_vm0 = vcmp.eq.f32.partialorder %v2093_v57, 8.507059e+37 }
 0x37a   : > { %v2284_v4 = vpop.eup %2283 }
 0x37b   : > { %v2085_v12 = vmul.f32 %v2284_v4, %v2068_v62  ;;  %vm2090_vm8 = vweird.f32 %v2284_v4 }
 0x37c   : > { %vm2091_vm15 = vmor %vm2089_vm14, %vm2090_vm8 }
 0x37d   : > { %v2086_v6 = vsub.f32 1.0, %v2085_v12 }
 0x37f   : > { %v2087_v52 = vmul.f32 %v2284_v4, %v2086_v6 }
 0x381   : > { %v2088_v1 = vadd.f32 %v2284_v4, %v2087_v52 }
 0x383   : > { %v2092_v0 = vsel %vm2091_vm15, %v2284_v4, %v2088_v1 }
 0x384   : > { %v2097_v36 = vsel %vm2094_vm0, %v2096_v60, %v2092_v0 }
 0x385   : > { %v2101_v3 = vrot.slane %v2097_v36, 4 }
 0x387   : > { %v2103_v42 = vsel %vm2102_vm1, %v2082_v40, %v2101_v3 }
 0x388   : > { %2105 = vst [vmem:[%s361_s11] sm:$0x77] %v2103_v42 }
 0x389 PF: > { %s20_s13 = sadd.s32 1, %s2291_s13  }
 0x38a   : > { %p17_p4 = scmp.ge.s32.totalorder %s20_s13, 4  }
 0x38c   :  { %19 = sbr.rel (!%p17_p4) target bundleno = 1 (0x1), region = 90 }

</bundles_post_ra>
